<compile_context>
chip_gen: v7x
topology: tpu7x:2x2x1
jax: 0.10.0
libtpu: 0.0.40
codegen_flags: <defaults>
</compile_context>

<pallas_src>
import functools

import jax
import jax.numpy as jnp
from jax.experimental import pallas as pl
from jax.experimental.pallas import tpu as pltpu

HIDDEN_SIZE = 64
INPUT_SIZE = 120
OUTPUT_SIZE = 1
NUM_LAYERS = 1       # single-layer LSTM, as in the module

GATE_PAD = 128       # per-gate lane width (>= HIDDEN_SIZE, multiple of 128)
IN_PAD = 128         # padded input-feature width (>= INPUT_SIZE, multiple of 128)
OUT_LANES = 128      # lane-dense output block width


def lstm_fc_kernel(x_ref, wih_ref, whh_ref, b_ref, wfc_ref, bfc_ref,
                   out_ref, gx_ref, *, seq_len, batch, gate_pad):
    """Whole LSTM recurrence + FC + sigmoid in a single grid step."""
    Gp = gate_pad

    # (1) Hoisted input projection for ALL timesteps in one f32 MXU matmul:
    #     (S*B, In_p) @ (In_p, 4*Gp) + bias  -> VMEM scratch (time-major rows).
    gx_ref[...] = (jnp.dot(x_ref[...], wih_ref[...],
                           preferred_element_type=jnp.float32) + b_ref[...])

    # (2) Serial recurrence, fully unrolled (static S).  Each gate occupies
    #     its own 128-lane block -> whole-vreg slices and elementwise math.
    #     Padded h/c lanes remain exactly 0 every step (see invariant above).
    h = jnp.zeros((batch, Gp), jnp.float32)
    c = jnp.zeros((batch, Gp), jnp.float32)
    for t in range(seq_len):
        lo, hi = t * batch, (t + 1) * batch
        # bf16 MXU operands (single pass), f32 accumulation, in-place
        # accumulate into the gx slice (v7x MRB-friendly form).
        gx_ref[lo:hi, :] += jnp.dot(h.astype(jnp.bfloat16), whh_ref[...],
                                    preferred_element_type=jnp.float32)
        gates = gx_ref[lo:hi, :]
        i_g = jax.nn.sigmoid(gates[:, 0 * Gp:1 * Gp])
        f_g = jax.nn.sigmoid(gates[:, 1 * Gp:2 * Gp])
        g_g = jnp.tanh(gates[:, 2 * Gp:3 * Gp])
        o_g = jax.nn.sigmoid(gates[:, 3 * Gp:4 * Gp])
        c = f_g * c + i_g * g_g
        h = o_g * jnp.tanh(c)

    # (3) Final FC + sigmoid on the last hidden state: VPU multiply + lane
    #     reduction (no 1-column MXU pass).  FC bias read as an SMEM scalar.
    #     Output written lane-dense (broadcast across 128 lanes); the wrapper
    #     slices column 0.
    logit = jnp.sum(h * wfc_ref[...], axis=-1, keepdims=True) + bfc_ref[0, 0]
    out_ref[...] = jnp.broadcast_to(jax.nn.sigmoid(logit),
                                    out_ref.shape).astype(out_ref.dtype)


def _pad_gate_cols(w, hidden, gate_pad):
    """(K, 4*hidden) -> (K, 4*gate_pad): each gate in its own 128-lane block.

    Pad columns are exactly zero — required for the padded-lane invariant.
    """
    blocks = [
        jnp.pad(w[:, k * hidden:(k + 1) * hidden],
                ((0, 0), (0, gate_pad - hidden)))
        for k in range(4)
    ]
    return jnp.concatenate(blocks, axis=1)


def simple_rnn_forward(x, params):
    """x: (B, S, In) float32 -> (B, 1) float32."""
    B, S, In = x.shape
    H = params["w_hh_t"].shape[0]
    Gp, Inp = GATE_PAD, IN_PAD
    Bp = ((B + 7) // 8) * 8   # sublane-align batch so per-step slices are tiled

    # One-time layout prep (outside the kernel; constant-folds under jit).
    wih_p = jnp.pad(_pad_gate_cols(params["w_ih_t"], H, Gp),
                    ((0, Inp - In), (0, 0)))                       # (Inp, 4*Gp) f32
    whh_p = jnp.pad(_pad_gate_cols(params["w_hh_t"], H, Gp),
                    ((0, Gp - H), (0, 0))).astype(jnp.bfloat16)    # (Gp, 4*Gp) bf16
    b_p = _pad_gate_cols(params["bias"], H, Gp)                    # (1, 4*Gp)
    wfc_p = jnp.pad(params["w_fc_t"].T, ((0, 0), (0, Gp - H)))     # (1, Gp)
    bfc = params["b_fc"].reshape(1, 1)                             # (1, 1) -> SMEM

    # Time-major, batch padded to Bp, flattened to (S*Bp, Inp).
    x_t = jnp.transpose(x, (1, 0, 2))                              # (S, B, In)
    x_p = jnp.pad(x_t, ((0, 0), (0, Bp - B), (0, Inp - In))
                  ).reshape(S * Bp, Inp)

    kernel = functools.partial(lstm_fc_kernel,
                               seq_len=S, batch=Bp, gate_pad=Gp)

    grid_spec = pltpu.PrefetchScalarGridSpec(
        num_scalar_prefetch=0,
        grid=(1,),  # whole recurrence lives inside one kernel invocation
        in_specs=[
            pl.BlockSpec((S * Bp, Inp), lambda i: (0, 0)),      # x (time-major)
            pl.BlockSpec((Inp, 4 * Gp), lambda i: (0, 0)),      # W_ih (f32, padded)
            pl.BlockSpec((Gp, 4 * Gp), lambda i: (0, 0)),       # W_hh (bf16, padded)
            pl.BlockSpec((1, 4 * Gp), lambda i: (0, 0)),        # LSTM bias (padded)
            pl.BlockSpec((1, Gp), lambda i: (0, 0)),            # W_fc row (padded)
            pl.BlockSpec(memory_space=pltpu.MemorySpace.SMEM),  # b_fc scalar
        ],
        out_specs=pl.BlockSpec((Bp, OUT_LANES), lambda i: (0, 0)),
        scratch_shapes=[
            pltpu.VMEM((S * Bp, 4 * Gp), jnp.float32),          # hoisted gates_x
        ],
    )

    out_full = pl.pallas_call(
        kernel,
        out_shape=jax.ShapeDtypeStruct((Bp, OUT_LANES), jnp.float32),
        grid_spec=grid_spec,
        compiler_params=pltpu.CompilerParams(
            dimension_semantics=("arbitrary",)),  # recurrence is serial anyway
    )(x_p, wih_p, whh_p, b_p, wfc_p, bfc)

    # Drop batch padding and the lane-broadcast copies of the logit.
    return out_full[:B, :OUTPUT_SIZE]


def init_params(key, input_size, hidden_size, output_size):
    """Deterministic init matching PyTorch default U(-1/sqrt(H), 1/sqrt(H))."""
    k = 1.0 / jnp.sqrt(jnp.float32(hidden_size))
    keys = jax.random.split(key, 6)
    w_ih = jax.random.uniform(keys[0], (4 * hidden_size, input_size),
                              jnp.float32, -k, k)
    w_hh = jax.random.uniform(keys[1], (4 * hidden_size, hidden_size),
                              jnp.float32, -k, k)
    b_ih = jax.random.uniform(keys[2], (4 * hidden_size,), jnp.float32, -k, k)
    b_hh = jax.random.uniform(keys[3], (4 * hidden_size,), jnp.float32, -k, k)
    w_fc = jax.random.uniform(keys[4], (output_size, hidden_size),
                              jnp.float32, -k, k)
    b_fc = jax.random.uniform(keys[5], (output_size,), jnp.float32, -k, k)
    return {
        "w_ih_t": w_ih.T,                                   # (In, 4H)
        "w_hh_t": w_hh.T,                                   # (H, 4H)
        "bias": (b_ih + b_hh).reshape(1, 4 * hidden_size),  # (1, 4H)
        "w_fc_t": w_fc.T,                                   # (H, 1)
        "b_fc": b_fc.reshape(1, output_size),               # (1, 1)
    }


def reference_forward(x, params):
    """Pure-JAX f32 reference (lax.scan LSTM) for numerical validation."""
    B, S, In = x.shape
    H = params["w_hh_t"].shape[0]

    def step(carry, x_t):
        h, c = carry
        gates = x_t @ params["w_ih_t"] + h @ params["w_hh_t"] + params["bias"]
        i_g = jax.nn.sigmoid(gates[:, 0:H])
        f_g = jax.nn.sigmoid(gates[:, H:2 * H])
        g_g = jnp.tanh(gates[:, 2 * H:3 * H])
        o_g = jax.nn.sigmoid(gates[:, 3 * H:4 * H])
        c_new = f_g * c + i_g * g_g
        h_new = o_g * jnp.tanh(c_new)
        return (h_new, c_new), None

    h0 = jnp.zeros((B, H), jnp.float32)
    c0 = jnp.zeros((B, H), jnp.float32)
    (h_last, _), _ = jax.lax.scan(step, (h0, c0), jnp.transpose(x, (1, 0, 2)))
    return jax.nn.sigmoid(h_last @ params["w_fc_t"] + params["b_fc"])


if __name__ == "__main__":
    B, S = 8, 8  # small batch / seq; input_size & hidden_size from the module
    key = jax.random.PRNGKey(0)
    kx, kp = jax.random.split(key)
    x = jax.random.normal(kx, (B, S, INPUT_SIZE), jnp.float32)
    params = init_params(kp, INPUT_SIZE, HIDDEN_SIZE, OUTPUT_SIZE)

    out = jax.jit(simple_rnn_forward)(x, params)
    out = jax.block_until_ready(out)

    ref = jax.block_until_ready(reference_forward(x, params))
    assert out.shape == (B, OUTPUT_SIZE), out.shape
    # bf16 recurrent-matmul operands (f32 accumulation/elementwise) introduce
    # ~1e-4..1e-3 deviation vs the pure-f32 reference over 8 steps, so the
    # tolerance is relaxed accordingly (outputs are sigmoid, in (0, 1)).
    assert jnp.allclose(out, ref, atol=2e-3, rtol=0.0), (out, ref)

    print("KERNEL_OK")
</pallas_src>

<mosaic_0001>
module attributes {stable_mosaic.version = 11 : i64} {
  func.func @lstm_fc_kernel(%arg0: i32, %arg1: memref<64x128xf32, #tpu.memory_space<vmem>>, %arg2: memref<128x512xf32, #tpu.memory_space<vmem>>, %arg3: memref<128x512xbf16, #tpu.memory_space<vmem>>, %arg4: memref<1x512xf32, #tpu.memory_space<vmem>>, %arg5: memref<1x128xf32, #tpu.memory_space<vmem>>, %arg6: memref<1x1xf32, #tpu.memory_space<smem>>, %arg7: memref<8x128xf32, #tpu.memory_space<vmem>>, %arg8: memref<64x512xf32, #tpu.memory_space<vmem>>) attributes {dimension_semantics = [#tpu.dimension_semantics<arbitrary>], iteration_bounds = array<i64: 1>, scalar_prefetch = 0 : i64, scratch_operands = 1 : i64, tpu.core_type = #tpu.core_type<tc>, window_params = [{pipeline_mode = #tpu.pipeline_mode<synchronous>, transform_indices = @transform_0, window_bounds = array<i64: 64, 128>}, {pipeline_mode = #tpu.pipeline_mode<synchronous>, transform_indices = @transform_1, window_bounds = array<i64: 128, 512>}, {pipeline_mode = #tpu.pipeline_mode<synchronous>, transform_indices = @transform_2, window_bounds = array<i64: 128, 512>}, {pipeline_mode = #tpu.pipeline_mode<synchronous>, transform_indices = @transform_3, window_bounds = array<i64: 1, 512>}, {pipeline_mode = #tpu.pipeline_mode<synchronous>, transform_indices = @transform_4, window_bounds = array<i64: 1, 128>}, {transform_indices = @transform_5, window_bounds = array<i64: 1, 1>}, {pipeline_mode = #tpu.pipeline_mode<synchronous>, transform_indices = @transform_6, window_bounds = array<i64: 8, 128>}]} {
    %c0 = arith.constant 0 : index
    %c0_0 = arith.constant 0 : index
    %0 = vector.load %arg1[%c0, %c0_0] : memref<64x128xf32, #tpu.memory_space<vmem>>, vector<64x128xf32>
    %c0_1 = arith.constant 0 : index
    %c0_2 = arith.constant 0 : index
    %1 = vector.load %arg2[%c0_1, %c0_2] : memref<128x512xf32, #tpu.memory_space<vmem>>, vector<128x512xf32>
    %cst = arith.constant dense<0.000000e+00> : vector<64x512xf32>
    %2 = tpu.matmul %0, %1, %cst {dimension_numbers = #tpu.dot_dimension_numbers<[1], [0], [0], [1], [0, 0, 1, 1], [], []>} : vector<64x128xf32>, vector<128x512xf32>, vector<64x512xf32> -> vector<64x512xf32>
    %c0_3 = arith.constant 0 : index
    %c0_4 = arith.constant 0 : index
    %3 = vector.load %arg4[%c0_3, %c0_4] : memref<1x512xf32, #tpu.memory_space<vmem>>, vector<1x512xf32>
    %4 = vector.broadcast %3 : vector<1x512xf32> to vector<64x512xf32>
    %5 = arith.addf %2, %4 : vector<64x512xf32>
    %c0_5 = arith.constant 0 : index
    %c0_6 = arith.constant 0 : index
    %6 = vector.load %arg8[%c0_5, %c0_6] : memref<64x512xf32, #tpu.memory_space<vmem>>, vector<64x512xf32>
    tpu.vector_store %arg8[%c0_5, %c0_6], %5 {strides = array<i32>} : memref<64x512xf32, #tpu.memory_space<vmem>>, vector<64x512xf32>,
    %cst_7 = arith.constant 0.000000e+00 : f32
    %7 = vector.broadcast %cst_7 : f32 to vector<8x128xf32>
    %cst_8 = arith.constant 0.000000e+00 : f32
    %8 = vector.broadcast %cst_8 : f32 to vector<8x128xf32>
    %c0_9 = arith.constant 0 : index
    %c0_10 = arith.constant 0 : index
    %9 = vector.load %arg8[%c0_9, %c0_10] : memref<64x512xf32, #tpu.memory_space<vmem>>, vector<8x512xf32>
    %10 = arith.truncf %7 : vector<8x128xf32> to vector<8x128xbf16>
    %c0_11 = arith.constant 0 : index
    %c0_12 = arith.constant 0 : index
    %11 = vector.load %arg3[%c0_11, %c0_12] : memref<128x512xbf16, #tpu.memory_space<vmem>>, vector<128x512xbf16>
    %cst_13 = arith.constant dense<0.000000e+00> : vector<8x512xf32>
    %12 = tpu.matmul %10, %11, %cst_13 {dimension_numbers = #tpu.dot_dimension_numbers<[1], [0], [0], [1], [0, 0, 1, 1], [], []>} : vector<8x128xbf16>, vector<128x512xbf16>, vector<8x512xf32> -> vector<8x512xf32>
    %13 = arith.addf %9, %12 : vector<8x512xf32>
    %c0_14 = arith.constant 0 : index
    %c0_15 = arith.constant 0 : index
    %14 = vector.load %arg8[%c0_14, %c0_15] : memref<64x512xf32, #tpu.memory_space<vmem>>, vector<8x512xf32>
    tpu.vector_store %arg8[%c0_14, %c0_15], %13 {strides = array<i32>} : memref<64x512xf32, #tpu.memory_space<vmem>>, vector<8x512xf32>,
    %c0_16 = arith.constant 0 : index
    %c0_17 = arith.constant 0 : index
    %15 = vector.load %arg8[%c0_16, %c0_17] : memref<64x512xf32, #tpu.memory_space<vmem>>, vector<8x512xf32>
    %16 = vector.extract_strided_slice %15 {offsets = [0, 0], sizes = [8, 128], strides = [1, 1]} : vector<8x512xf32> to vector<8x128xf32>
    %17 = arith.negf %16 : vector<8x128xf32>
    %18 = math.exp %17 : vector<8x128xf32>
    %cst_18 = arith.constant 1.000000e+00 : f32
    %19 = vector.broadcast %cst_18 : f32 to vector<8x128xf32>
    %20 = arith.addf %19, %18 : vector<8x128xf32>
    %21 = arith.divf %19, %20 : vector<8x128xf32>
    %22 = vector.extract_strided_slice %15 {offsets = [0, 128], sizes = [8, 128], strides = [1, 1]} : vector<8x512xf32> to vector<8x128xf32>
    %23 = arith.negf %22 : vector<8x128xf32>
    %24 = math.exp %23 : vector<8x128xf32>
    %cst_19 = arith.constant 1.000000e+00 : f32
    %25 = vector.broadcast %cst_19 : f32 to vector<8x128xf32>
    %26 = arith.addf %25, %24 : vector<8x128xf32>
    %27 = arith.divf %25, %26 : vector<8x128xf32>
    %28 = vector.extract_strided_slice %15 {offsets = [0, 256], sizes = [8, 128], strides = [1, 1]} : vector<8x512xf32> to vector<8x128xf32>
    %29 = math.tanh %28 : vector<8x128xf32>
    %30 = vector.extract_strided_slice %15 {offsets = [0, 384], sizes = [8, 128], strides = [1, 1]} : vector<8x512xf32> to vector<8x128xf32>
    %31 = arith.negf %30 : vector<8x128xf32>
    %32 = math.exp %31 : vector<8x128xf32>
    %cst_20 = arith.constant 1.000000e+00 : f32
    %33 = vector.broadcast %cst_20 : f32 to vector<8x128xf32>
    %34 = arith.addf %33, %32 : vector<8x128xf32>
    %35 = arith.divf %33, %34 : vector<8x128xf32>
    %36 = arith.mulf %27, %8 : vector<8x128xf32>
    %37 = arith.mulf %21, %29 : vector<8x128xf32>
    %38 = arith.addf %36, %37 : vector<8x128xf32>
    %39 = math.tanh %38 : vector<8x128xf32>
    %40 = arith.mulf %35, %39 : vector<8x128xf32>
    %c8 = arith.constant 8 : index
    %c0_21 = arith.constant 0 : index
    %41 = vector.load %arg8[%c8, %c0_21] : memref<64x512xf32, #tpu.memory_space<vmem>>, vector<8x512xf32>
    %42 = arith.truncf %40 : vector<8x128xf32> to vector<8x128xbf16>
    %c0_22 = arith.constant 0 : index
    %c0_23 = arith.constant 0 : index
    %43 = vector.load %arg3[%c0_22, %c0_23] : memref<128x512xbf16, #tpu.memory_space<vmem>>, vector<128x512xbf16>
    %cst_24 = arith.constant dense<0.000000e+00> : vector<8x512xf32>
    %44 = tpu.matmul %42, %43, %cst_24 {dimension_numbers = #tpu.dot_dimension_numbers<[1], [0], [0], [1], [0, 0, 1, 1], [], []>} : vector<8x128xbf16>, vector<128x512xbf16>, vector<8x512xf32> -> vector<8x512xf32>
    %45 = arith.addf %41, %44 : vector<8x512xf32>
    %c8_25 = arith.constant 8 : index
    %c0_26 = arith.constant 0 : index
    %46 = vector.load %arg8[%c8_25, %c0_26] : memref<64x512xf32, #tpu.memory_space<vmem>>, vector<8x512xf32>
    tpu.vector_store %arg8[%c8_25, %c0_26], %45 {strides = array<i32>} : memref<64x512xf32, #tpu.memory_space<vmem>>, vector<8x512xf32>,
    %c8_27 = arith.constant 8 : index
    %c0_28 = arith.constant 0 : index
    %47 = vector.load %arg8[%c8_27, %c0_28] : memref<64x512xf32, #tpu.memory_space<vmem>>, vector<8x512xf32>
    %48 = vector.extract_strided_slice %47 {offsets = [0, 0], sizes = [8, 128], strides = [1, 1]} : vector<8x512xf32> to vector<8x128xf32>
    %49 = arith.negf %48 : vector<8x128xf32>
    %50 = math.exp %49 : vector<8x128xf32>
    %cst_29 = arith.constant 1.000000e+00 : f32
    %51 = vector.broadcast %cst_29 : f32 to vector<8x128xf32>
    %52 = arith.addf %51, %50 : vector<8x128xf32>
    %53 = arith.divf %51, %52 : vector<8x128xf32>
    %54 = vector.extract_strided_slice %47 {offsets = [0, 128], sizes = [8, 128], strides = [1, 1]} : vector<8x512xf32> to vector<8x128xf32>
    %55 = arith.negf %54 : vector<8x128xf32>
    %56 = math.exp %55 : vector<8x128xf32>
    %cst_30 = arith.constant 1.000000e+00 : f32
    %57 = vector.broadcast %cst_30 : f32 to vector<8x128xf32>
    %58 = arith.addf %57, %56 : vector<8x128xf32>
    %59 = arith.divf %57, %58 : vector<8x128xf32>
    %60 = vector.extract_strided_slice %47 {offsets = [0, 256], sizes = [8, 128], strides = [1, 1]} : vector<8x512xf32> to vector<8x128xf32>
    %61 = math.tanh %60 : vector<8x128xf32>
    %62 = vector.extract_strided_slice %47 {offsets = [0, 384], sizes = [8, 128], strides = [1, 1]} : vector<8x512xf32> to vector<8x128xf32>
    %63 = arith.negf %62 : vector<8x128xf32>
    %64 = math.exp %63 : vector<8x128xf32>
    %cst_31 = arith.constant 1.000000e+00 : f32
    %65 = vector.broadcast %cst_31 : f32 to vector<8x128xf32>
    %66 = arith.addf %65, %64 : vector<8x128xf32>
    %67 = arith.divf %65, %66 : vector<8x128xf32>
    %68 = arith.mulf %59, %38 : vector<8x128xf32>
    %69 = arith.mulf %53, %61 : vector<8x128xf32>
    %70 = arith.addf %68, %69 : vector<8x128xf32>
    %71 = math.tanh %70 : vector<8x128xf32>
    %72 = arith.mulf %67, %71 : vector<8x128xf32>
    %c16 = arith.constant 16 : index
    %c0_32 = arith.constant 0 : index
    %73 = vector.load %arg8[%c16, %c0_32] : memref<64x512xf32, #tpu.memory_space<vmem>>, vector<8x512xf32>
    %74 = arith.truncf %72 : vector<8x128xf32> to vector<8x128xbf16>
    %c0_33 = arith.constant 0 : index
    %c0_34 = arith.constant 0 : index
    %75 = vector.load %arg3[%c0_33, %c0_34] : memref<128x512xbf16, #tpu.memory_space<vmem>>, vector<128x512xbf16>
    %cst_35 = arith.constant dense<0.000000e+00> : vector<8x512xf32>
    %76 = tpu.matmul %74, %75, %cst_35 {dimension_numbers = #tpu.dot_dimension_numbers<[1], [0], [0], [1], [0, 0, 1, 1], [], []>} : vector<8x128xbf16>, vector<128x512xbf16>, vector<8x512xf32> -> vector<8x512xf32>
    %77 = arith.addf %73, %76 : vector<8x512xf32>
    %c16_36 = arith.constant 16 : index
    %c0_37 = arith.constant 0 : index
    %78 = vector.load %arg8[%c16_36, %c0_37] : memref<64x512xf32, #tpu.memory_space<vmem>>, vector<8x512xf32>
    tpu.vector_store %arg8[%c16_36, %c0_37], %77 {strides = array<i32>} : memref<64x512xf32, #tpu.memory_space<vmem>>, vector<8x512xf32>,
    %c16_38 = arith.constant 16 : index
    %c0_39 = arith.constant 0 : index
    %79 = vector.load %arg8[%c16_38, %c0_39] : memref<64x512xf32, #tpu.memory_space<vmem>>, vector<8x512xf32>
    %80 = vector.extract_strided_slice %79 {offsets = [0, 0], sizes = [8, 128], strides = [1, 1]} : vector<8x512xf32> to vector<8x128xf32>
    %81 = arith.negf %80 : vector<8x128xf32>
    %82 = math.exp %81 : vector<8x128xf32>
    %cst_40 = arith.constant 1.000000e+00 : f32
    %83 = vector.broadcast %cst_40 : f32 to vector<8x128xf32>
    %84 = arith.addf %83, %82 : vector<8x128xf32>
    %85 = arith.divf %83, %84 : vector<8x128xf32>
    %86 = vector.extract_strided_slice %79 {offsets = [0, 128], sizes = [8, 128], strides = [1, 1]} : vector<8x512xf32> to vector<8x128xf32>
    %87 = arith.negf %86 : vector<8x128xf32>
    %88 = math.exp %87 : vector<8x128xf32>
    %cst_41 = arith.constant 1.000000e+00 : f32
    %89 = vector.broadcast %cst_41 : f32 to vector<8x128xf32>
    %90 = arith.addf %89, %88 : vector<8x128xf32>
    %91 = arith.divf %89, %90 : vector<8x128xf32>
    %92 = vector.extract_strided_slice %79 {offsets = [0, 256], sizes = [8, 128], strides = [1, 1]} : vector<8x512xf32> to vector<8x128xf32>
    %93 = math.tanh %92 : vector<8x128xf32>
    %94 = vector.extract_strided_slice %79 {offsets = [0, 384], sizes = [8, 128], strides = [1, 1]} : vector<8x512xf32> to vector<8x128xf32>
    %95 = arith.negf %94 : vector<8x128xf32>
    %96 = math.exp %95 : vector<8x128xf32>
    %cst_42 = arith.constant 1.000000e+00 : f32
    %97 = vector.broadcast %cst_42 : f32 to vector<8x128xf32>
    %98 = arith.addf %97, %96 : vector<8x128xf32>
    %99 = arith.divf %97, %98 : vector<8x128xf32>
    %100 = arith.mulf %91, %70 : vector<8x128xf32>
    %101 = arith.mulf %85, %93 : vector<8x128xf32>
    %102 = arith.addf %100, %101 : vector<8x128xf32>
    %103 = math.tanh %102 : vector<8x128xf32>
    %104 = arith.mulf %99, %103 : vector<8x128xf32>
    %c24 = arith.constant 24 : index
    %c0_43 = arith.constant 0 : index
    %105 = vector.load %arg8[%c24, %c0_43] : memref<64x512xf32, #tpu.memory_space<vmem>>, vector<8x512xf32>
    %106 = arith.truncf %104 : vector<8x128xf32> to vector<8x128xbf16>
    %c0_44 = arith.constant 0 : index
    %c0_45 = arith.constant 0 : index
    %107 = vector.load %arg3[%c0_44, %c0_45] : memref<128x512xbf16, #tpu.memory_space<vmem>>, vector<128x512xbf16>
    %cst_46 = arith.constant dense<0.000000e+00> : vector<8x512xf32>
    %108 = tpu.matmul %106, %107, %cst_46 {dimension_numbers = #tpu.dot_dimension_numbers<[1], [0], [0], [1], [0, 0, 1, 1], [], []>} : vector<8x128xbf16>, vector<128x512xbf16>, vector<8x512xf32> -> vector<8x512xf32>
    %109 = arith.addf %105, %108 : vector<8x512xf32>
    %c24_47 = arith.constant 24 : index
    %c0_48 = arith.constant 0 : index
    %110 = vector.load %arg8[%c24_47, %c0_48] : memref<64x512xf32, #tpu.memory_space<vmem>>, vector<8x512xf32>
    tpu.vector_store %arg8[%c24_47, %c0_48], %109 {strides = array<i32>} : memref<64x512xf32, #tpu.memory_space<vmem>>, vector<8x512xf32>,
    %c24_49 = arith.constant 24 : index
    %c0_50 = arith.constant 0 : index
    %111 = vector.load %arg8[%c24_49, %c0_50] : memref<64x512xf32, #tpu.memory_space<vmem>>, vector<8x512xf32>
    %112 = vector.extract_strided_slice %111 {offsets = [0, 0], sizes = [8, 128], strides = [1, 1]} : vector<8x512xf32> to vector<8x128xf32>
    %113 = arith.negf %112 : vector<8x128xf32>
    %114 = math.exp %113 : vector<8x128xf32>
    %cst_51 = arith.constant 1.000000e+00 : f32
    %115 = vector.broadcast %cst_51 : f32 to vector<8x128xf32>
    %116 = arith.addf %115, %114 : vector<8x128xf32>
    %117 = arith.divf %115, %116 : vector<8x128xf32>
    %118 = vector.extract_strided_slice %111 {offsets = [0, 128], sizes = [8, 128], strides = [1, 1]} : vector<8x512xf32> to vector<8x128xf32>
    %119 = arith.negf %118 : vector<8x128xf32>
    %120 = math.exp %119 : vector<8x128xf32>
    %cst_52 = arith.constant 1.000000e+00 : f32
    %121 = vector.broadcast %cst_52 : f32 to vector<8x128xf32>
    %122 = arith.addf %121, %120 : vector<8x128xf32>
    %123 = arith.divf %121, %122 : vector<8x128xf32>
    %124 = vector.extract_strided_slice %111 {offsets = [0, 256], sizes = [8, 128], strides = [1, 1]} : vector<8x512xf32> to vector<8x128xf32>
    %125 = math.tanh %124 : vector<8x128xf32>
    %126 = vector.extract_strided_slice %111 {offsets = [0, 384], sizes = [8, 128], strides = [1, 1]} : vector<8x512xf32> to vector<8x128xf32>
    %127 = arith.negf %126 : vector<8x128xf32>
    %128 = math.exp %127 : vector<8x128xf32>
    %cst_53 = arith.constant 1.000000e+00 : f32
    %129 = vector.broadcast %cst_53 : f32 to vector<8x128xf32>
    %130 = arith.addf %129, %128 : vector<8x128xf32>
    %131 = arith.divf %129, %130 : vector<8x128xf32>
    %132 = arith.mulf %123, %102 : vector<8x128xf32>
    %133 = arith.mulf %117, %125 : vector<8x128xf32>
    %134 = arith.addf %132, %133 : vector<8x128xf32>
    %135 = math.tanh %134 : vector<8x128xf32>
    %136 = arith.mulf %131, %135 : vector<8x128xf32>
    %c32 = arith.constant 32 : index
    %c0_54 = arith.constant 0 : index
    %137 = vector.load %arg8[%c32, %c0_54] : memref<64x512xf32, #tpu.memory_space<vmem>>, vector<8x512xf32>
    %138 = arith.truncf %136 : vector<8x128xf32> to vector<8x128xbf16>
    %c0_55 = arith.constant 0 : index
    %c0_56 = arith.constant 0 : index
    %139 = vector.load %arg3[%c0_55, %c0_56] : memref<128x512xbf16, #tpu.memory_space<vmem>>, vector<128x512xbf16>
    %cst_57 = arith.constant dense<0.000000e+00> : vector<8x512xf32>
    %140 = tpu.matmul %138, %139, %cst_57 {dimension_numbers = #tpu.dot_dimension_numbers<[1], [0], [0], [1], [0, 0, 1, 1], [], []>} : vector<8x128xbf16>, vector<128x512xbf16>, vector<8x512xf32> -> vector<8x512xf32>
    %141 = arith.addf %137, %140 : vector<8x512xf32>
    %c32_58 = arith.constant 32 : index
    %c0_59 = arith.constant 0 : index
    %142 = vector.load %arg8[%c32_58, %c0_59] : memref<64x512xf32, #tpu.memory_space<vmem>>, vector<8x512xf32>
    tpu.vector_store %arg8[%c32_58, %c0_59], %141 {strides = array<i32>} : memref<64x512xf32, #tpu.memory_space<vmem>>, vector<8x512xf32>,
    %c32_60 = arith.constant 32 : index
    %c0_61 = arith.constant 0 : index
    %143 = vector.load %arg8[%c32_60, %c0_61] : memref<64x512xf32, #tpu.memory_space<vmem>>, vector<8x512xf32>
    %144 = vector.extract_strided_slice %143 {offsets = [0, 0], sizes = [8, 128], strides = [1, 1]} : vector<8x512xf32> to vector<8x128xf32>
    %145 = arith.negf %144 : vector<8x128xf32>
    %146 = math.exp %145 : vector<8x128xf32>
    %cst_62 = arith.constant 1.000000e+00 : f32
    %147 = vector.broadcast %cst_62 : f32 to vector<8x128xf32>
    %148 = arith.addf %147, %146 : vector<8x128xf32>
    %149 = arith.divf %147, %148 : vector<8x128xf32>
    %150 = vector.extract_strided_slice %143 {offsets = [0, 128], sizes = [8, 128], strides = [1, 1]} : vector<8x512xf32> to vector<8x128xf32>
    %151 = arith.negf %150 : vector<8x128xf32>
    %152 = math.exp %151 : vector<8x128xf32>
    %cst_63 = arith.constant 1.000000e+00 : f32
    %153 = vector.broadcast %cst_63 : f32 to vector<8x128xf32>
    %154 = arith.addf %153, %152 : vector<8x128xf32>
    %155 = arith.divf %153, %154 : vector<8x128xf32>
    %156 = vector.extract_strided_slice %143 {offsets = [0, 256], sizes = [8, 128], strides = [1, 1]} : vector<8x512xf32> to vector<8x128xf32>
    %157 = math.tanh %156 : vector<8x128xf32>
    %158 = vector.extract_strided_slice %143 {offsets = [0, 384], sizes = [8, 128], strides = [1, 1]} : vector<8x512xf32> to vector<8x128xf32>
    %159 = arith.negf %158 : vector<8x128xf32>
    %160 = math.exp %159 : vector<8x128xf32>
    %cst_64 = arith.constant 1.000000e+00 : f32
    %161 = vector.broadcast %cst_64 : f32 to vector<8x128xf32>
    %162 = arith.addf %161, %160 : vector<8x128xf32>
    %163 = arith.divf %161, %162 : vector<8x128xf32>
    %164 = arith.mulf %155, %134 : vector<8x128xf32>
    %165 = arith.mulf %149, %157 : vector<8x128xf32>
    %166 = arith.addf %164, %165 : vector<8x128xf32>
    %167 = math.tanh %166 : vector<8x128xf32>
    %168 = arith.mulf %163, %167 : vector<8x128xf32>
    %c40 = arith.constant 40 : index
    %c0_65 = arith.constant 0 : index
    %169 = vector.load %arg8[%c40, %c0_65] : memref<64x512xf32, #tpu.memory_space<vmem>>, vector<8x512xf32>
    %170 = arith.truncf %168 : vector<8x128xf32> to vector<8x128xbf16>
    %c0_66 = arith.constant 0 : index
    %c0_67 = arith.constant 0 : index
    %171 = vector.load %arg3[%c0_66, %c0_67] : memref<128x512xbf16, #tpu.memory_space<vmem>>, vector<128x512xbf16>
    %cst_68 = arith.constant dense<0.000000e+00> : vector<8x512xf32>
    %172 = tpu.matmul %170, %171, %cst_68 {dimension_numbers = #tpu.dot_dimension_numbers<[1], [0], [0], [1], [0, 0, 1, 1], [], []>} : vector<8x128xbf16>, vector<128x512xbf16>, vector<8x512xf32> -> vector<8x512xf32>
    %173 = arith.addf %169, %172 : vector<8x512xf32>
    %c40_69 = arith.constant 40 : index
    %c0_70 = arith.constant 0 : index
    %174 = vector.load %arg8[%c40_69, %c0_70] : memref<64x512xf32, #tpu.memory_space<vmem>>, vector<8x512xf32>
    tpu.vector_store %arg8[%c40_69, %c0_70], %173 {strides = array<i32>} : memref<64x512xf32, #tpu.memory_space<vmem>>, vector<8x512xf32>,
    %c40_71 = arith.constant 40 : index
    %c0_72 = arith.constant 0 : index
    %175 = vector.load %arg8[%c40_71, %c0_72] : memref<64x512xf32, #tpu.memory_space<vmem>>, vector<8x512xf32>
    %176 = vector.extract_strided_slice %175 {offsets = [0, 0], sizes = [8, 128], strides = [1, 1]} : vector<8x512xf32> to vector<8x128xf32>
    %177 = arith.negf %176 : vector<8x128xf32>
    %178 = math.exp %177 : vector<8x128xf32>
    %cst_73 = arith.constant 1.000000e+00 : f32
    %179 = vector.broadcast %cst_73 : f32 to vector<8x128xf32>
    %180 = arith.addf %179, %178 : vector<8x128xf32>
    %181 = arith.divf %179, %180 : vector<8x128xf32>
    %182 = vector.extract_strided_slice %175 {offsets = [0, 128], sizes = [8, 128], strides = [1, 1]} : vector<8x512xf32> to vector<8x128xf32>
    %183 = arith.negf %182 : vector<8x128xf32>
    %184 = math.exp %183 : vector<8x128xf32>
    %cst_74 = arith.constant 1.000000e+00 : f32
    %185 = vector.broadcast %cst_74 : f32 to vector<8x128xf32>
    %186 = arith.addf %185, %184 : vector<8x128xf32>
    %187 = arith.divf %185, %186 : vector<8x128xf32>
    %188 = vector.extract_strided_slice %175 {offsets = [0, 256], sizes = [8, 128], strides = [1, 1]} : vector<8x512xf32> to vector<8x128xf32>
    %189 = math.tanh %188 : vector<8x128xf32>
    %190 = vector.extract_strided_slice %175 {offsets = [0, 384], sizes = [8, 128], strides = [1, 1]} : vector<8x512xf32> to vector<8x128xf32>
    %191 = arith.negf %190 : vector<8x128xf32>
    %192 = math.exp %191 : vector<8x128xf32>
    %cst_75 = arith.constant 1.000000e+00 : f32
    %193 = vector.broadcast %cst_75 : f32 to vector<8x128xf32>
    %194 = arith.addf %193, %192 : vector<8x128xf32>
    %195 = arith.divf %193, %194 : vector<8x128xf32>
    %196 = arith.mulf %187, %166 : vector<8x128xf32>
    %197 = arith.mulf %181, %189 : vector<8x128xf32>
    %198 = arith.addf %196, %197 : vector<8x128xf32>
    %199 = math.tanh %198 : vector<8x128xf32>
    %200 = arith.mulf %195, %199 : vector<8x128xf32>
    %c48 = arith.constant 48 : index
    %c0_76 = arith.constant 0 : index
    %201 = vector.load %arg8[%c48, %c0_76] : memref<64x512xf32, #tpu.memory_space<vmem>>, vector<8x512xf32>
    %202 = arith.truncf %200 : vector<8x128xf32> to vector<8x128xbf16>
    %c0_77 = arith.constant 0 : index
    %c0_78 = arith.constant 0 : index
    %203 = vector.load %arg3[%c0_77, %c0_78] : memref<128x512xbf16, #tpu.memory_space<vmem>>, vector<128x512xbf16>
    %cst_79 = arith.constant dense<0.000000e+00> : vector<8x512xf32>
    %204 = tpu.matmul %202, %203, %cst_79 {dimension_numbers = #tpu.dot_dimension_numbers<[1], [0], [0], [1], [0, 0, 1, 1], [], []>} : vector<8x128xbf16>, vector<128x512xbf16>, vector<8x512xf32> -> vector<8x512xf32>
    %205 = arith.addf %201, %204 : vector<8x512xf32>
    %c48_80 = arith.constant 48 : index
    %c0_81 = arith.constant 0 : index
    %206 = vector.load %arg8[%c48_80, %c0_81] : memref<64x512xf32, #tpu.memory_space<vmem>>, vector<8x512xf32>
    tpu.vector_store %arg8[%c48_80, %c0_81], %205 {strides = array<i32>} : memref<64x512xf32, #tpu.memory_space<vmem>>, vector<8x512xf32>,
    %c48_82 = arith.constant 48 : index
    %c0_83 = arith.constant 0 : index
    %207 = vector.load %arg8[%c48_82, %c0_83] : memref<64x512xf32, #tpu.memory_space<vmem>>, vector<8x512xf32>
    %208 = vector.extract_strided_slice %207 {offsets = [0, 0], sizes = [8, 128], strides = [1, 1]} : vector<8x512xf32> to vector<8x128xf32>
    %209 = arith.negf %208 : vector<8x128xf32>
    %210 = math.exp %209 : vector<8x128xf32>
    %cst_84 = arith.constant 1.000000e+00 : f32
    %211 = vector.broadcast %cst_84 : f32 to vector<8x128xf32>
    %212 = arith.addf %211, %210 : vector<8x128xf32>
    %213 = arith.divf %211, %212 : vector<8x128xf32>
    %214 = vector.extract_strided_slice %207 {offsets = [0, 128], sizes = [8, 128], strides = [1, 1]} : vector<8x512xf32> to vector<8x128xf32>
    %215 = arith.negf %214 : vector<8x128xf32>
    %216 = math.exp %215 : vector<8x128xf32>
    %cst_85 = arith.constant 1.000000e+00 : f32
    %217 = vector.broadcast %cst_85 : f32 to vector<8x128xf32>
    %218 = arith.addf %217, %216 : vector<8x128xf32>
    %219 = arith.divf %217, %218 : vector<8x128xf32>
    %220 = vector.extract_strided_slice %207 {offsets = [0, 256], sizes = [8, 128], strides = [1, 1]} : vector<8x512xf32> to vector<8x128xf32>
    %221 = math.tanh %220 : vector<8x128xf32>
    %222 = vector.extract_strided_slice %207 {offsets = [0, 384], sizes = [8, 128], strides = [1, 1]} : vector<8x512xf32> to vector<8x128xf32>
    %223 = arith.negf %222 : vector<8x128xf32>
    %224 = math.exp %223 : vector<8x128xf32>
    %cst_86 = arith.constant 1.000000e+00 : f32
    %225 = vector.broadcast %cst_86 : f32 to vector<8x128xf32>
    %226 = arith.addf %225, %224 : vector<8x128xf32>
    %227 = arith.divf %225, %226 : vector<8x128xf32>
    %228 = arith.mulf %219, %198 : vector<8x128xf32>
    %229 = arith.mulf %213, %221 : vector<8x128xf32>
    %230 = arith.addf %228, %229 : vector<8x128xf32>
    %231 = math.tanh %230 : vector<8x128xf32>
    %232 = arith.mulf %227, %231 : vector<8x128xf32>
    %c56 = arith.constant 56 : index
    %c0_87 = arith.constant 0 : index
    %233 = vector.load %arg8[%c56, %c0_87] : memref<64x512xf32, #tpu.memory_space<vmem>>, vector<8x512xf32>
    %234 = arith.truncf %232 : vector<8x128xf32> to vector<8x128xbf16>
    %c0_88 = arith.constant 0 : index
    %c0_89 = arith.constant 0 : index
    %235 = vector.load %arg3[%c0_88, %c0_89] : memref<128x512xbf16, #tpu.memory_space<vmem>>, vector<128x512xbf16>
    %cst_90 = arith.constant dense<0.000000e+00> : vector<8x512xf32>
    %236 = tpu.matmul %234, %235, %cst_90 {dimension_numbers = #tpu.dot_dimension_numbers<[1], [0], [0], [1], [0, 0, 1, 1], [], []>} : vector<8x128xbf16>, vector<128x512xbf16>, vector<8x512xf32> -> vector<8x512xf32>
    %237 = arith.addf %233, %236 : vector<8x512xf32>
    %c56_91 = arith.constant 56 : index
    %c0_92 = arith.constant 0 : index
    %238 = vector.load %arg8[%c56_91, %c0_92] : memref<64x512xf32, #tpu.memory_space<vmem>>, vector<8x512xf32>
    tpu.vector_store %arg8[%c56_91, %c0_92], %237 {strides = array<i32>} : memref<64x512xf32, #tpu.memory_space<vmem>>, vector<8x512xf32>,
    %c56_93 = arith.constant 56 : index
    %c0_94 = arith.constant 0 : index
    %239 = vector.load %arg8[%c56_93, %c0_94] : memref<64x512xf32, #tpu.memory_space<vmem>>, vector<8x512xf32>
    %240 = vector.extract_strided_slice %239 {offsets = [0, 0], sizes = [8, 128], strides = [1, 1]} : vector<8x512xf32> to vector<8x128xf32>
    %241 = arith.negf %240 : vector<8x128xf32>
    %242 = math.exp %241 : vector<8x128xf32>
    %cst_95 = arith.constant 1.000000e+00 : f32
    %243 = vector.broadcast %cst_95 : f32 to vector<8x128xf32>
    %244 = arith.addf %243, %242 : vector<8x128xf32>
    %245 = arith.divf %243, %244 : vector<8x128xf32>
    %246 = vector.extract_strided_slice %239 {offsets = [0, 128], sizes = [8, 128], strides = [1, 1]} : vector<8x512xf32> to vector<8x128xf32>
    %247 = arith.negf %246 : vector<8x128xf32>
    %248 = math.exp %247 : vector<8x128xf32>
    %cst_96 = arith.constant 1.000000e+00 : f32
    %249 = vector.broadcast %cst_96 : f32 to vector<8x128xf32>
    %250 = arith.addf %249, %248 : vector<8x128xf32>
    %251 = arith.divf %249, %250 : vector<8x128xf32>
    %252 = vector.extract_strided_slice %239 {offsets = [0, 256], sizes = [8, 128], strides = [1, 1]} : vector<8x512xf32> to vector<8x128xf32>
    %253 = math.tanh %252 : vector<8x128xf32>
    %254 = vector.extract_strided_slice %239 {offsets = [0, 384], sizes = [8, 128], strides = [1, 1]} : vector<8x512xf32> to vector<8x128xf32>
    %255 = arith.negf %254 : vector<8x128xf32>
    %256 = math.exp %255 : vector<8x128xf32>
    %cst_97 = arith.constant 1.000000e+00 : f32
    %257 = vector.broadcast %cst_97 : f32 to vector<8x128xf32>
    %258 = arith.addf %257, %256 : vector<8x128xf32>
    %259 = arith.divf %257, %258 : vector<8x128xf32>
    %260 = arith.mulf %251, %230 : vector<8x128xf32>
    %261 = arith.mulf %245, %253 : vector<8x128xf32>
    %262 = arith.addf %260, %261 : vector<8x128xf32>
    %263 = math.tanh %262 : vector<8x128xf32>
    %264 = arith.mulf %259, %263 : vector<8x128xf32>
    %c0_98 = arith.constant 0 : index
    %c0_99 = arith.constant 0 : index
    %265 = vector.load %arg5[%c0_98, %c0_99] : memref<1x128xf32, #tpu.memory_space<vmem>>, vector<1x128xf32>
    %266 = vector.broadcast %265 : vector<1x128xf32> to vector<8x128xf32>
    %267 = arith.mulf %264, %266 : vector<8x128xf32>
    %cst_100 = arith.constant dense<0.000000e+00> : vector<8xf32>
    %268 = vector.multi_reduction <add>, %267, %cst_100 [1] : vector<8x128xf32> to vector<8xf32>
    %269 = vector.shape_cast %268 : vector<8xf32> to vector<8x1xf32>
    %c0_101 = arith.constant 0 : index
    %c0_102 = arith.constant 0 : index
    %270 = memref.load %arg6[%c0_101, %c0_102] : memref<1x1xf32, #tpu.memory_space<smem>>
    %271 = vector.broadcast %270 : f32 to vector<8x1xf32>
    %272 = arith.addf %269, %271 : vector<8x1xf32>
    %273 = arith.negf %272 : vector<8x1xf32>
    %274 = math.exp %273 : vector<8x1xf32>
    %cst_103 = arith.constant 1.000000e+00 : f32
    %275 = vector.broadcast %cst_103 : f32 to vector<8x1xf32>
    %276 = arith.addf %275, %274 : vector<8x1xf32>
    %277 = arith.divf %275, %276 : vector<8x1xf32>
    %278 = vector.shape_cast %277 : vector<8x1xf32> to vector<8x1xf32>
    %279 = vector.broadcast %278 : vector<8x1xf32> to vector<8x128xf32>
    %c0_104 = arith.constant 0 : index
    %c0_105 = arith.constant 0 : index
    %280 = vector.load %arg7[%c0_104, %c0_105] : memref<8x128xf32, #tpu.memory_space<vmem>>, vector<8x128xf32>
    tpu.vector_store %arg7[%c0_104, %c0_105], %279 {strides = array<i32>} : memref<8x128xf32, #tpu.memory_space<vmem>>, vector<8x128xf32>,
    return
  }
  func.func @transform_0(%arg0: i32) -> (i32, i32) {
    %c0_i32 = arith.constant 0 : i32
    %c0_i32_0 = arith.constant 0 : i32
    %c0_i32_1 = arith.constant 0 : i32
    return %c0_i32, %c0_i32_0 : i32, i32
  }
  func.func @transform_1(%arg0: i32) -> (i32, i32) {
    %c0_i32 = arith.constant 0 : i32
    %c0_i32_0 = arith.constant 0 : i32
    %c0_i32_1 = arith.constant 0 : i32
    return %c0_i32, %c0_i32_0 : i32, i32
  }
  func.func @transform_2(%arg0: i32) -> (i32, i32) {
    %c0_i32 = arith.constant 0 : i32
    %c0_i32_0 = arith.constant 0 : i32
    %c0_i32_1 = arith.constant 0 : i32
    return %c0_i32, %c0_i32_0 : i32, i32
  }
  func.func @transform_3(%arg0: i32) -> (i32, i32) {
    %c0_i32 = arith.constant 0 : i32
    %c0_i32_0 = arith.constant 0 : i32
    %c0_i32_1 = arith.constant 0 : i32
    return %c0_i32, %c0_i32_0 : i32, i32
  }
  func.func @transform_4(%arg0: i32) -> (i32, i32) {
    %c0_i32 = arith.constant 0 : i32
    %c0_i32_0 = arith.constant 0 : i32
    %c0_i32_1 = arith.constant 0 : i32
    return %c0_i32, %c0_i32_0 : i32, i32
  }
  func.func @transform_5(%arg0: i32) -> (i32, i32) {
    %c0_i32 = arith.constant 0 : i32
    %c0_i32_0 = arith.constant 0 : i32
    %c0_i32_1 = arith.constant 0 : i32
    return %c0_i32, %c0_i32_0 : i32, i32
  }
  func.func @transform_6(%arg0: i32) -> (i32, i32) {
    %c0_i32 = arith.constant 0 : i32
    %c0_i32_0 = arith.constant 0 : i32
    %c0_i32_1 = arith.constant 0 : i32
    return %c0_i32, %c0_i32_0 : i32, i32
  }
}

</mosaic_0001>

<bundles_post_ra>
// kernel: simple_rnn_forward.1
= control target key start
LH: loop header
LB: loop body
LE: loop exit
PB: predicated region body
PF: predicated region fallthrough
CT: control target
= control target key end

     0   :  { %v3496_v3 = vmov 0.0   ;;  %s4491_s1 = inlined_call_operand.vmem [shape: f32[128,512], index: 1, kind: input, shape index: {}]   ;;  %s4492_s2 = inlined_call_operand.vmem [shape: bf16[128,512], index: 2, kind: input, shape index: {}]   ;;  %s4493_s0 = inlined_call_operand.vmem [shape: f32[64,128], index: 0, kind: input, shape index: {}]   ;;  %s4494_s3 = inlined_call_operand.vmem [shape: f32[1,512], index: 3, kind: input, shape index: {}]   ;;  %s4495_s4 = inlined_call_operand.vmem [shape: f32[1,128], index: 4, kind: input, shape index: {}]   ;;  %s4496_s5 = inlined_call_operand.<no memory space> [shape: f32[1,1], index: 5, kind: input, shape index: {}]   ;;  %s4497_s6 = inlined_call_operand.vmem [shape: f32[8,128], index: 6, kind: output, shape index: {}]  }
   0x1   :  { %v34_v0 = vld [vmem:[%s4491_s1 + $0x8] sm:$0xff]  ;;  %v36_v2 = vld [vmem:[%s4491_s1 + $0x18] sm:$0xff]  ;;  %183 = vmatprep.mubr.f32.mxu0 %v3496_v3  ;;  %296 = vmatprep.mubr.f32.mxu1 %v3496_v3  ;;  %v33_v6 = vld [vmem:[%s4491_s1] sm:$0xff] }
   0x2   :  { %v38_v1 = vld [vmem:[%s4491_s1 + $0x28] sm:$0xff]  ;;  %v40_v5 = vld [vmem:[%s4491_s1 + $0x38] sm:$0xff]  ;;  %v37_v7 = vld [vmem:[%s4491_s1 + $0x20] sm:$0xff] }
   0x3   :  { %v3202_v4 = vpack.c.bf16 %v38_v1, %v34_v0  ;;  %v3234_v8 = vpack.c.bf16 %v40_v5, %v36_v2  ;;  %v3204_v9 = vpack.c.bf16 %v37_v7, %v33_v6  ;;  %v35_v10 = vld [vmem:[%s4491_s1 + $0x10] sm:$0xff]  ;;  %v42_v12 = vld [vmem:[%s4491_s1 + $0x48] sm:$0xff]  ;;  %v44_v15 = vld [vmem:[%s4491_s1 + $0x58] sm:$0xff] }
   0x4   :  { %v39_v11 = vld [vmem:[%s4491_s1 + $0x30] sm:$0xff]  ;;  %v46_v14 = vld [vmem:[%s4491_s1 + $0x68] sm:$0xff]  ;;  %v48_v16 = vld [vmem:[%s4491_s1 + $0x78] sm:$0xff] }
   0x5   :  { %3203 = vmatprep.subr.bf16.mxu0 %v3202_v4  ;;  %v3236_v13 = vpack.c.bf16 %v39_v11, %v35_v10  ;;  %3235 = vmatprep.subr.bf16.mxu1 %v3234_v8  ;;  %v3206_v17 = vpack.c.bf16 %v46_v14, %v42_v12  ;;  %v3238_v18 = vpack.c.bf16 %v48_v16, %v44_v15  ;;  %v41_v19 = vld [vmem:[%s4491_s1 + $0x40] sm:$0xff]  ;;  %v43_v21 = vld [vmem:[%s4491_s1 + $0x50] sm:$0xff]  ;;  %v50_v24 = vld [vmem:[%s4491_s1 + $0x88] sm:$0xff] }
   0x6   :  { %3205 = vmatpush1.bf16.msra.mxu0 %v3204_v9  ;;  %v45_v20 = vld [vmem:[%s4491_s1 + $0x60] sm:$0xff]  ;;  %v47_v23 = vld [vmem:[%s4491_s1 + $0x70] sm:$0xff]  ;;  %v54_v25 = vld [vmem:[%s4491_s1 + $0xa8] sm:$0xff] }
   0x7   :  { %3237 = vmatpush1.bf16.msra.mxu1 %v3236_v13  ;;  %v3208_v22 = vpack.c.bf16 %v45_v20, %v41_v19  ;;  %3207 = vmatprep.subr.bf16.mxu0 %v3206_v17  ;;  %v3240_v26 = vpack.c.bf16 %v47_v23, %v43_v21  ;;  %v3210_v27 = vpack.c.bf16 %v54_v25, %v50_v24  ;;  %v52_v28 = vld [vmem:[%s4491_s1 + $0x98] sm:$0xff]  ;;  %v49_v30 = vld [vmem:[%s4491_s1 + $0x80] sm:$0xff]  ;;  %v51_v33 = vld [vmem:[%s4491_s1 + $0x90] sm:$0xff] }
   0x8   :  { %3239 = vmatprep.subr.bf16.mxu1 %v3238_v18  ;;  %v56_v29 = vld [vmem:[%s4491_s1 + $0xb8] sm:$0xff]  ;;  %v53_v32 = vld [vmem:[%s4491_s1 + $0xa0] sm:$0xff]  ;;  %v55_v34 = vld [vmem:[%s4491_s1 + $0xb0] sm:$0xff] }
   0x9   :  { %v3242_v31 = vpack.c.bf16 %v56_v29, %v52_v28  ;;  %v3212_v35 = vpack.c.bf16 %v53_v32, %v49_v30  ;;  %v58_v36 = vld [vmem:[%s4491_s1 + $0xc8] sm:$0xff]  ;;  %v60_v38 = vld [vmem:[%s4491_s1 + $0xd8] sm:$0xff]  ;;  %v3244_v39 = vpack.c.bf16 %v55_v34, %v51_v33  ;;  %v57_v42 = vld [vmem:[%s4491_s1 + $0xc0] sm:$0xff] }
   0xa   :  { %3209 = vmatpush1.bf16.msra.mxu0 %v3208_v22  ;;  %v62_v37 = vld [vmem:[%s4491_s1 + $0xe8] sm:$0xff]  ;;  %v64_v41 = vld [vmem:[%s4491_s1 + $0xf8] sm:$0xff]  ;;  %v61_v43 = vld [vmem:[%s4491_s1 + $0xe0] sm:$0xff] }
   0xb   :  { %3241 = vmatpush1.bf16.msra.mxu1 %v3240_v26  ;;  %3211 = vmatprep.subr.bf16.mxu0 %v3210_v27  ;;  %v3214_v40 = vpack.c.bf16 %v62_v37, %v58_v36  ;;  %v3246_v44 = vpack.c.bf16 %v64_v41, %v60_v38  ;;  %v59_v45 = vld [vmem:[%s4491_s1 + $0xd0] sm:$0xff]  ;;  %v66_v47 = vld [vmem:[%s4491_s1 + $0x108] sm:$0xff]  ;;  %v68_v49 = vld [vmem:[%s4491_s1 + $0x118] sm:$0xff]  ;;  %v3216_v51 = vpack.c.bf16 %v61_v43, %v57_v42 }
   0xc   :  { %3243 = vmatprep.subr.bf16.mxu1 %v3242_v31  ;;  %v63_v46 = vld [vmem:[%s4491_s1 + $0xf0] sm:$0xff]  ;;  %v70_v48 = vld [vmem:[%s4491_s1 + $0x128] sm:$0xff]  ;;  %v72_v50 = vld [vmem:[%s4491_s1 + $0x138] sm:$0xff] }
   0xd   :  { %v3248_v52 = vpack.c.bf16 %v63_v46, %v59_v45  ;;  %v3218_v53 = vpack.c.bf16 %v70_v48, %v66_v47  ;;  %v65_v54 = vld [vmem:[%s4491_s1 + $0x100] sm:$0xff]  ;;  %v67_v56 = vld [vmem:[%s4491_s1 + $0x110] sm:$0xff]  ;;  %v3250_v57 = vpack.c.bf16 %v72_v50, %v68_v49  ;;  %v74_v59 = vld [vmem:[%s4491_s1 + $0x148] sm:$0xff] }
   0xe   :  { %3213 = vmatpush1.bf16.msra.mxu0 %v3212_v35  ;;  %v69_v55 = vld [vmem:[%s4491_s1 + $0x120] sm:$0xff]  ;;  %v71_v58 = vld [vmem:[%s4491_s1 + $0x130] sm:$0xff]  ;;  %v78_v60 = vld [vmem:[%s4491_s1 + $0x168] sm:$0xff] }
   0xf   :  { %3245 = vmatpush1.bf16.msra.mxu1 %v3244_v39  ;;  %3215 = vmatprep.subr.bf16.mxu0 %v3214_v40  ;;  %v76_v61 = vld [vmem:[%s4491_s1 + $0x158] sm:$0xff]  ;;  %v3220_v63 = vpack.c.bf16 %v69_v55, %v65_v54  ;;  %v3252_v0 = vpack.c.bf16 %v71_v58, %v67_v56  ;;  %v3222_v1 = vpack.c.bf16 %v78_v60, %v74_v59  ;;  %v73_v2 = vld [vmem:[%s4491_s1 + $0x140] sm:$0xff]  ;;  %v75_v5 = vld [vmem:[%s4491_s1 + $0x150] sm:$0xff] }
  0x10   :  { %3247 = vmatprep.subr.bf16.mxu1 %v3246_v44  ;;  %v80_v62 = vld [vmem:[%s4491_s1 + $0x178] sm:$0xff]  ;;  %v77_v4 = vld [vmem:[%s4491_s1 + $0x160] sm:$0xff]  ;;  %v79_v7 = vld [vmem:[%s4491_s1 + $0x170] sm:$0xff] }
  0x11   :  { %v3254_v6 = vpack.c.bf16 %v80_v62, %v76_v61  ;;  %v82_v8 = vld [vmem:[%s4491_s1 + $0x188] sm:$0xff]  ;;  %v84_v10 = vld [vmem:[%s4491_s1 + $0x198] sm:$0xff]  ;;  %v3224_v12 = vpack.c.bf16 %v77_v4, %v73_v2  ;;  %v81_v13 = vld [vmem:[%s4491_s1 + $0x180] sm:$0xff]  ;;  %v3256_v16 = vpack.c.bf16 %v79_v7, %v75_v5 }
  0x12   :  { %3217 = vmatpush1.bf16.msra.mxu0 %v3216_v51  ;;  %v86_v9 = vld [vmem:[%s4491_s1 + $0x1a8] sm:$0xff]  ;;  %v88_v11 = vld [vmem:[%s4491_s1 + $0x1b8] sm:$0xff]  ;;  %v85_v14 = vld [vmem:[%s4491_s1 + $0x1a0] sm:$0xff] }
  0x13   :  { %3249 = vmatpush1.bf16.msra.mxu1 %v3248_v52  ;;  %3219 = vmatprep.subr.bf16.mxu0 %v3218_v53  ;;  %v83_v15 = vld [vmem:[%s4491_s1 + $0x190] sm:$0xff]  ;;  %v3226_v17 = vpack.c.bf16 %v86_v9, %v82_v8  ;;  %v90_v19 = vld [vmem:[%s4491_s1 + $0x1c8] sm:$0xff]  ;;  %v3258_v20 = vpack.c.bf16 %v88_v11, %v84_v10  ;;  %v92_v22 = vld [vmem:[%s4491_s1 + $0x1d8] sm:$0xff]  ;;  %v3228_v24 = vpack.c.bf16 %v85_v14, %v81_v13  ;;  %v4498_v11 = vmov 0  }
  0x14   :  { %3251 = vmatprep.subr.bf16.mxu1 %v3250_v57  ;;  %v87_v18 = vld [vmem:[%s4491_s1 + $0x1b0] sm:$0xff]  ;;  %v94_v21 = vld [vmem:[%s4491_s1 + $0x1e8] sm:$0xff]  ;;  %v96_v23 = vld [vmem:[%s4491_s1 + $0x1f8] sm:$0xff] }
  0x15   :  { %v89_v25 = vld [vmem:[%s4491_s1 + $0x1c0] sm:$0xff]  ;;  %v3260_v26 = vpack.c.bf16 %v87_v18, %v83_v15  ;;  %v3230_v27 = vpack.c.bf16 %v94_v21, %v90_v19  ;;  %v91_v29 = vld [vmem:[%s4491_s1 + $0x1d0] sm:$0xff]  ;;  %v3262_v30 = vpack.c.bf16 %v96_v23, %v92_v22  ;;  %v3735_v35 = vld [vmem:[%s4492_s2 + $0xc] ss:$16 sps:$4 sm:$0xff]  }
  0x16   :  { %3221 = vmatpush1.bf16.msra.mxu0 %v3220_v63  ;;  %v93_v28 = vld [vmem:[%s4491_s1 + $0x1e0] sm:$0xff]  ;;  %v95_v31 = vld [vmem:[%s4491_s1 + $0x1f0] sm:$0xff]  ;;  %v3749_v38 = vld [vmem:[%s4492_s2 + $0x8] ss:$16 sps:$4 sm:$0xff]  }
  0x17   :  { %3253 = vmatpush1.bf16.msra.mxu1 %v3252_v0  ;;  %3223 = vmatprep.subr.bf16.mxu0 %v3222_v1  ;;  %v3232_v32 = vpack.c.bf16 %v93_v28, %v89_v25  ;;  %v3264_v33 = vpack.c.bf16 %v95_v31, %v91_v29  ;;  %v3730_v34 = vld [vmem:[%s4492_s2 + $0x4] ss:$16 sps:$4 sm:$0xff]   ;;  %v3743_v37 = vld [vmem:[%s4492_s2] ss:$16 sps:$4 sm:$0xff]   ;;  %v3760_v40 = vld [vmem:[%s4492_s2 + $0x2c] ss:$16 sps:$4 sm:$0xff]  }
  0x18   :  { %3255 = vmatprep.subr.bf16.mxu1 %v3254_v6  ;;  %v25_v36 = vld [vmem:[%s4493_s0] sm:$0xff]  ;;  %v26_v41 = vld [vmem:[%s4493_s0 + $0x8] sm:$0xff]  ;;  %v27_v46 = vld [vmem:[%s4493_s0 + $0x10] sm:$0xff] }
  0x19   :  { %v3755_v39 = vld [vmem:[%s4492_s2 + $0x24] ss:$16 sps:$4 sm:$0xff]   ;;  %v3769_v42 = vld [vmem:[%s4492_s2 + $0x20] ss:$16 sps:$4 sm:$0xff]   ;;  %v3776_v43 = vld [vmem:[%s4492_s2 + $0x28] ss:$16 sps:$4 sm:$0xff]  }
  0x1a   :  { %3225 = vmatpush1.bf16.msra.mxu0 %v3224_v12  ;;  %v3783_v44 = vld [vmem:[%s4492_s2 + $0x44] ss:$16 sps:$4 sm:$0xff]   ;;  %v3789_v45 = vld [vmem:[%s4492_s2 + $0x4c] ss:$16 sps:$4 sm:$0xff]   ;;  %v3798_v47 = vld [vmem:[%s4492_s2 + $0x40] ss:$16 sps:$4 sm:$0xff]  }
  0x1b   :  { %3257 = vmatpush1.bf16.msra.mxu1 %v3256_v16  ;;  %3227 = vmatprep.subr.bf16.mxu0 %v3226_v17  ;;  %v3805_v48 = vld [vmem:[%s4492_s2 + $0x48] ss:$16 sps:$4 sm:$0xff]   ;;  %v3815_v50 = vld [vmem:[%s4492_s2 + $0x64] ss:$16 sps:$4 sm:$0xff]   ;;  %v3821_v51 = vld [vmem:[%s4492_s2 + $0x60] ss:$16 sps:$4 sm:$0xff]  }
  0x1c   :  { %3259 = vmatprep.subr.bf16.mxu1 %v3258_v20  ;;  %v28_v49 = vld [vmem:[%s4493_s0 + $0x18] sm:$0xff]  ;;  %v3839_v54 = vld [vmem:[%s4492_s2 + $0x84] ss:$16 sps:$4 sm:$0xff]   ;;  %v3854_v57 = vld [vmem:[%s4492_s2 + $0x80] ss:$16 sps:$4 sm:$0xff]  }
  0x1d   :  { %v3826_v52 = vld [vmem:[%s4492_s2 + $0x6c] ss:$16 sps:$4 sm:$0xff]   ;;  %v3832_v53 = vld [vmem:[%s4492_s2 + $0x68] ss:$16 sps:$4 sm:$0xff]   ;;  %v29_v56 = vld [vmem:[%s4493_s0 + $0x20] sm:$0xff] }
  0x1e   :  { %3229 = vmatpush1.bf16.msra.mxu0 %v3228_v24  ;;  %v3844_v55 = vld [vmem:[%s4492_s2 + $0x8c] ss:$16 sps:$4 sm:$0xff]   ;;  %v3860_v58 = vld [vmem:[%s4492_s2 + $0x88] ss:$16 sps:$4 sm:$0xff]   ;;  %v3866_v59 = vld [vmem:[%s4492_s2 + $0xa4] ss:$16 sps:$4 sm:$0xff]  }
  0x1f   :  { %3261 = vmatpush1.bf16.msra.mxu1 %v3260_v26  ;;  %3231 = vmatprep.subr.bf16.mxu0 %v3230_v27  ;;  %v3873_v60 = vld [vmem:[%s4492_s2 + $0xac] ss:$16 sps:$4 sm:$0xff]   ;;  %v3883_v62 = vld [vmem:[%s4492_s2 + $0xa0] ss:$16 sps:$4 sm:$0xff]   ;;  %v3889_v63 = vld [vmem:[%s4492_s2 + $0xa8] ss:$16 sps:$4 sm:$0xff]  }
  0x20   :  { %3263 = vmatprep.subr.bf16.mxu1 %v3262_v30  ;;  %v30_v61 = vld [vmem:[%s4493_s0 + $0x28] sm:$0xff]  ;;  %v3895_v0 = vld [vmem:[%s4492_s2 + $0xc4] ss:$16 sps:$4 sm:$0xff]   ;;  %v3914_v4 = vld [vmem:[%s4492_s2 + $0xc0] ss:$16 sps:$4 sm:$0xff]  }
  0x21   :  { %v3902_v1 = vld [vmem:[%s4492_s2 + $0xcc] ss:$16 sps:$4 sm:$0xff]   ;;  %v31_v2 = vld [vmem:[%s4493_s0 + $0x30] sm:$0xff]  ;;  %v3921_v5 = vld [vmem:[%s4492_s2 + $0xc8] ss:$16 sps:$4 sm:$0xff]  }
  0x22   :  { %3233 = vmatpush1.bf16.msra.mxu0 %v3232_v32  ;;  %v3928_v6 = vld [vmem:[%s4492_s2 + $0xe4] ss:$16 sps:$4 sm:$0xff]   ;;  %v3934_v7 = vld [vmem:[%s4492_s2 + $0xec] ss:$16 sps:$4 sm:$0xff]   ;;  %v3943_v9 = vld [vmem:[%s4492_s2 + $0xe0] ss:$16 sps:$4 sm:$0xff]  }
  0x23   :  { %3265 = vmatpush1.bf16.msra.mxu1 %v3264_v33  ;;  %573 = vmatprep.subr.bf16.mxu0 %v3730_v34  ;;  %v32_v8 = vld [vmem:[%s4493_s0 + $0x38] sm:$0xff]  ;;  %v97_v14 = vld [vmem:[%s4494_s3] sm:$0xf] }
  0x24   :  { %614 = vmatprep.subr.bf16.mxu1 %v3735_v35  ;;  %v3950_v10 = vld [vmem:[%s4492_s2 + $0xe8] ss:$16 sps:$4 sm:$0xff]  }
  0x25   :  { %184 = vmatmul.mubr.f32.vlgmr.msra.gmra.mrb[0].mxu0 %v25_v36 }
  0x26   :  { %297 = vmatmul.mubr.f32.vlgmr.msra.gmra.mrb[0].mxu1 %v25_v36  ;;  %574 = vmatpush1.bf16.msra.mxu0 %v3743_v37 }
  0x27   :  { %615 = vmatpush1.bf16.msra.mxu1 %v3749_v38  ;;  %189 = vmatprep.mubr.f32.mxu0 %v3496_v3 }
  0x28   :  { %302 = vmatprep.mubr.f32.mxu1 %v3496_v3  ;;  %575 = vmatprep.subr.bf16.mxu0 %v3755_v39 }
  0x29   :  { %190 = vmatmul.mubr.f32.gmra.mrb[2].mxu0 %v26_v41  ;;  %616 = vmatprep.subr.bf16.mxu1 %v3760_v40 }
  0x2a   :  { %303 = vmatmul.mubr.f32.gmra.mrb[2].mxu1 %v26_v41  ;;  %576 = vmatpush1.bf16.msra.mxu0 %v3769_v42 }
  0x2b   :  { %617 = vmatpush1.bf16.msra.mxu1 %v3776_v43  ;;  %195 = vmatprep.mubr.f32.mxu0 %v3496_v3 }
  0x2c   :  { %308 = vmatprep.mubr.f32.mxu1 %v3496_v3  ;;  %577 = vmatprep.subr.bf16.mxu0 %v3783_v44 }
  0x2d   :  { %196 = vmatmul.mubr.f32.gmra.mrb[4].mxu0 %v27_v46  ;;  %618 = vmatprep.subr.bf16.mxu1 %v3789_v45 }
  0x2e   :  { %309 = vmatmul.mubr.f32.gmra.mrb[4].mxu1 %v27_v46  ;;  %578 = vmatpush1.bf16.msra.mxu0 %v3798_v47 }
  0x2f   :  { %619 = vmatpush1.bf16.msra.mxu1 %v3805_v48  ;;  %201 = vmatprep.mubr.f32.mxu0 %v3496_v3 }
  0x30   :  { %314 = vmatprep.mubr.f32.mxu1 %v3496_v3  ;;  %579 = vmatprep.subr.bf16.mxu0 %v3815_v50 }
  0x31   :  { %202 = vmatmul.mubr.f32.gmra.mrb[6].mxu0 %v28_v49  ;;  %620 = vmatprep.subr.bf16.mxu1 %v3826_v52 }
  0x32   :  { %315 = vmatmul.mubr.f32.gmra.mrb[6].mxu1 %v28_v49  ;;  %580 = vmatpush1.bf16.msra.mxu0 %v3821_v51 }
  0x33   :  { %621 = vmatpush1.bf16.msra.mxu1 %v3832_v53  ;;  %207 = vmatprep.mubr.f32.mxu0 %v3496_v3 }
  0x34   :  { %320 = vmatprep.mubr.f32.mxu1 %v3496_v3  ;;  %581 = vmatprep.subr.bf16.mxu0 %v3839_v54 }
  0x35   :  { %208 = vmatmul.mubr.f32.gmra.mrb[8].mxu0 %v29_v56  ;;  %622 = vmatprep.subr.bf16.mxu1 %v3844_v55 }
  0x36   :  { %321 = vmatmul.mubr.f32.gmra.mrb[8].mxu1 %v29_v56  ;;  %582 = vmatpush1.bf16.msra.mxu0 %v3854_v57 }
  0x37   :  { %623 = vmatpush1.bf16.msra.mxu1 %v3860_v58  ;;  %213 = vmatprep.mubr.f32.mxu0 %v3496_v3 }
  0x38   :  { %326 = vmatprep.mubr.f32.mxu1 %v3496_v3  ;;  %583 = vmatprep.subr.bf16.mxu0 %v3866_v59 }
  0x39   :  { %214 = vmatmul.mubr.f32.gmra.mrb[10].mxu0 %v30_v61  ;;  %624 = vmatprep.subr.bf16.mxu1 %v3873_v60 }
  0x3a   :  { %327 = vmatmul.mubr.f32.gmra.mrb[10].mxu1 %v30_v61  ;;  %584 = vmatpush1.bf16.msra.mxu0 %v3883_v62 }
  0x3b   :  { %625 = vmatpush1.bf16.msra.mxu1 %v3889_v63  ;;  %219 = vmatprep.mubr.f32.mxu0 %v3496_v3 }
  0x3c   :  { %332 = vmatprep.mubr.f32.mxu1 %v3496_v3  ;;  %585 = vmatprep.subr.bf16.mxu0 %v3895_v0 }
  0x3d   :  { %220 = vmatmul.mubr.f32.gmra.mrb[12].mxu0 %v31_v2  ;;  %626 = vmatprep.subr.bf16.mxu1 %v3902_v1 }
  0x3e   :  { %333 = vmatmul.mubr.f32.gmra.mrb[12].mxu1 %v31_v2  ;;  %586 = vmatpush1.bf16.msra.mxu0 %v3914_v4 }
  0x3f   :  { %627 = vmatpush1.bf16.msra.mxu1 %v3921_v5  ;;  %225 = vmatprep.mubr.f32.mxu0 %v3496_v3 }
  0x40   :  { %338 = vmatprep.mubr.f32.mxu1 %v3496_v3  ;;  %587 = vmatprep.subr.bf16.mxu0 %v3928_v6  ;;  %v99_v3 = vlaneseq }
  0x41   :  { %226 = vmatmul.mubr.f32.gmra.mrb[14].mxu0 %v32_v8  ;;  %628 = vmatprep.subr.bf16.mxu1 %v3934_v7 }
  0x42   :  { %339 = vmatmul.mubr.f32.gmra.mrb[14].mxu1 %v32_v8  ;;  %588 = vmatpush1.bf16.msra.mxu0 %v3943_v9  ;;  %v100_v12 = vshrl.u32 %v99_v3, 7 }
  0x43   :  { %629 = vmatpush1.bf16.msra.mxu1 %v3950_v10  ;;  %605 = vmatprep.mubr.bf16.mxu0 %v4498_v11 }
  0x44   :  { %646 = vmatprep.mubr.bf16.mxu1 %v4498_v11  ;;  %888 = vmatprep.subr.bf16.mxu0 %v3730_v34  ;;  %v101_v13 = vsub.s32 0, %v100_v12  ;;  %v105_v16 = vsub.s32 1, %v100_v12  ;;  %v109_v17 = vsub.s32 2, %v100_v12  ;;  %v113_v20 = vsub.s32 3, %v100_v12 }
  0x45   :  { %606 = vmatmul.mubr.bf16.vlgmr.msra.gmra.mrb[16].mxu0 %v4498_v11  ;;  %929 = vmatprep.subr.bf16.mxu1 %v3735_v35 }
  0x46   :  { %647 = vmatmul.mubr.bf16.vlgmr.msra.gmra.mrb[16].mxu1 %v4498_v11  ;;  %889 = vmatpush1.bf16.msra.mxu0 %v3743_v37  ;;  %v102_v22 = vrot.slane %v97_v14, %v101_v13  ;;  %v106_v23 = vrot.slane %v97_v14, %v105_v16  ;;  %v110_v25 = vrot.slane %v97_v14, %v109_v17 }
  0x47   :  { %930 = vmatpush1.bf16.msra.mxu1 %v3749_v38  ;;  %890 = vmatprep.subr.bf16.mxu0 %v3755_v39  ;;  %v114_v28 = vrot.slane %v97_v14, %v113_v20 }
  0x48   :  { %931 = vmatprep.subr.bf16.mxu1 %v3760_v40  ;;  %920 = vmatprep.mubr.bf16.mxu0 %v4498_v11 }
  0x49   :  { %961 = vmatprep.mubr.bf16.mxu1 %v4498_v11 }
  0x4a   :  { %891 = vmatpush1.bf16.msra.mxu0 %v3769_v42 }
  0x4b   :  { %932 = vmatpush1.bf16.msra.mxu1 %v3776_v43  ;;  %892 = vmatprep.subr.bf16.mxu0 %v3783_v44 }
  0x4c   :  { %933 = vmatprep.subr.bf16.mxu1 %v3789_v45 }
  0x4e   :  { %893 = vmatpush1.bf16.msra.mxu0 %v3798_v47 }
  0x4f   :  { %934 = vmatpush1.bf16.msra.mxu1 %v3805_v48  ;;  %894 = vmatprep.subr.bf16.mxu0 %v3815_v50 }
  0x50   :  { %935 = vmatprep.subr.bf16.mxu1 %v3826_v52 }
  0x52   :  { %895 = vmatpush1.bf16.msra.mxu0 %v3821_v51 }
  0x53   :  { %936 = vmatpush1.bf16.msra.mxu1 %v3832_v53  ;;  %896 = vmatprep.subr.bf16.mxu0 %v3839_v54 }
  0x54   :  { %937 = vmatprep.subr.bf16.mxu1 %v3844_v55 }
  0x56   :  { %897 = vmatpush1.bf16.msra.mxu0 %v3854_v57 }
  0x57   :  { %938 = vmatpush1.bf16.msra.mxu1 %v3860_v58  ;;  %898 = vmatprep.subr.bf16.mxu0 %v3866_v59 }
  0x58   :  { %939 = vmatprep.subr.bf16.mxu1 %v3873_v60 }
  0x5a   :  { %899 = vmatpush1.bf16.msra.mxu0 %v3883_v62 }
  0x5b   :  { %940 = vmatpush1.bf16.msra.mxu1 %v3889_v63  ;;  %900 = vmatprep.subr.bf16.mxu0 %v3895_v0 }
  0x5c   :  { %941 = vmatprep.subr.bf16.mxu1 %v3902_v1 }
  0x5e   :  { %901 = vmatpush1.bf16.msra.mxu0 %v3914_v4 }
  0x5f   :  { %942 = vmatpush1.bf16.msra.mxu1 %v3921_v5  ;;  %902 = vmatprep.subr.bf16.mxu0 %v3928_v6 }
  0x60   :  { %943 = vmatprep.subr.bf16.mxu1 %v3934_v7 }
  0x62   :  { %903 = vmatpush1.bf16.msra.mxu0 %v3943_v9 }
  0x63   :  { %944 = vmatpush1.bf16.msra.mxu1 %v3950_v10  ;;  %1203 = vmatprep.subr.bf16.mxu0 %v3730_v34 }
  0x64   :  { %1244 = vmatprep.subr.bf16.mxu1 %v3735_v35 }
  0xf8   :  { %v4000_v15 = vpop.f32.mrb[0].mxu0 }
  0xf9   :  { %v4002_v18 = vpop.f32.mrb[1].mxu0  ;;  %v4004_v19 = vpop.f32.mrb[0].mxu1 }
  0xfa   :  { %v4006_v21 = vpop.f32.mrb[1].mxu1 }
  0xfc   :  { %v191_v24 = vpop.f32.mrb[2].mxu0 }
  0xfd   :  { %v4008_v26 = vadd.f32 %v191_v24, %v102_v22  ;;  %v193_v27 = vpop.f32.mrb[3].mxu0  ;;  %v304_v29 = vpop.f32.mrb[2].mxu1 }
  0xfe   :  { %v4010_v30 = vadd.f32 %v193_v27, %v106_v23  ;;  %v4012_v31 = vadd.f32 %v304_v29, %v110_v25  ;;  %v306_v32 = vpop.f32.mrb[3].mxu1 }
  0xff   :  { %v4014_v33 = vadd.f32 %v306_v32, %v114_v28 }
 0x100   :  { %v197_v36 = vpop.f32.mrb[4].mxu0 }
 0x101   :  { %v4016_v41 = vadd.f32 %v197_v36, %v102_v22  ;;  %v199_v46 = vpop.f32.mrb[5].mxu0  ;;  %v310_v49 = vpop.f32.mrb[4].mxu1 }
 0x102   :  { %v4018_v56 = vadd.f32 %v199_v46, %v106_v23  ;;  %v4020_v61 = vadd.f32 %v310_v49, %v110_v25  ;;  %v312_v2 = vpop.f32.mrb[5].mxu1 }
 0x103   :  { %v4022_v8 = vadd.f32 %v312_v2, %v114_v28 }
 0x104   :  { %v203_v3 = vpop.f32.mrb[6].mxu0 }
 0x105   :  { %4500 = vst [vmem:[#allocation4_spill] sm:$0xff] %v4022_v8  ;;  %v4024_v12 = vadd.f32 %v203_v3, %v102_v22  ;;  %v205_v13 = vpop.f32.mrb[7].mxu0  ;;  %v316_v14 = vpop.f32.mrb[6].mxu1 }
 0x106   :  { %v4026_v16 = vadd.f32 %v205_v13, %v106_v23  ;;  %v4028_v17 = vadd.f32 %v316_v14, %v110_v25  ;;  %v318_v20 = vpop.f32.mrb[7].mxu1 }
 0x107   :  { %4501 = vst [vmem:[#allocation5_spill] sm:$0xff] %v4024_v12  ;;  %v4030_v24 = vadd.f32 %v318_v20, %v114_v28 }
 0x108   :  { %4502 = vst [vmem:[#allocation6_spill] sm:$0xff] %v4026_v16  ;;  %4503 = vst [vmem:[#allocation7_spill] sm:$0xff] %v4028_v17  ;;  %v209_v27 = vpop.f32.mrb[8].mxu0 }
 0x109   :  { %4504 = vst [vmem:[#allocation8_spill] sm:$0xff] %v4030_v24  ;;  %v4032_v29 = vadd.f32 %v209_v27, %v102_v22  ;;  %v211_v32 = vpop.f32.mrb[9].mxu0  ;;  %v322_v36 = vpop.f32.mrb[8].mxu1 }
 0x10a   :  { %v4034_v46 = vadd.f32 %v211_v32, %v106_v23  ;;  %v4036_v49 = vadd.f32 %v322_v36, %v110_v25  ;;  %v324_v2 = vpop.f32.mrb[9].mxu1 }
 0x10b   :  { %4505 = vst [vmem:[#allocation9_spill] sm:$0xff] %v4032_v29  ;;  %v4038_v3 = vadd.f32 %v324_v2, %v114_v28 }
 0x10c   :  { %4506 = vst [vmem:[#allocation10_spill] sm:$0xff] %v4034_v46  ;;  %4507 = vst [vmem:[#allocation11_spill] sm:$0xff] %v4036_v49  ;;  %v215_v11 = vpop.f32.mrb[10].mxu0 }
 0x10d   :  { %4508 = vst [vmem:[#allocation12_spill] sm:$0xff] %v4038_v3  ;;  %v4040_v13 = vadd.f32 %v215_v11, %v102_v22  ;;  %v217_v14 = vpop.f32.mrb[11].mxu0  ;;  %v328_v16 = vpop.f32.mrb[10].mxu1 }
 0x10e   :  { %v4042_v17 = vadd.f32 %v217_v14, %v106_v23  ;;  %v4044_v20 = vadd.f32 %v328_v16, %v110_v25  ;;  %v330_v27 = vpop.f32.mrb[11].mxu1 }
 0x10f   :  { %4509 = vst [vmem:[#allocation13_spill] sm:$0xff] %v4040_v13  ;;  %v4046_v29 = vadd.f32 %v330_v27, %v114_v28 }
 0x110   :  { %4510 = vst [vmem:[#allocation14_spill] sm:$0xff] %v4042_v17  ;;  %4511 = vst [vmem:[#allocation15_spill] sm:$0xff] %v4044_v20  ;;  %v221_v24 = vpop.f32.mrb[12].mxu0 }
 0x111   :  { %4512 = vst [vmem:[#allocation16_spill] sm:$0xff] %v4046_v29  ;;  %v4048_v32 = vadd.f32 %v221_v24, %v102_v22  ;;  %v223_v36 = vpop.f32.mrb[13].mxu0  ;;  %v334_v46 = vpop.f32.mrb[12].mxu1 }
 0x112   :  { %v4050_v49 = vadd.f32 %v223_v36, %v106_v23  ;;  %v4052_v2 = vadd.f32 %v334_v46, %v110_v25  ;;  %v336_v11 = vpop.f32.mrb[13].mxu1  ;;  %v188_v46 = vadd.f32 %v4002_v18, %v106_v23  ;;  %v299_v36 = vadd.f32 %v4004_v19, %v110_v25 }
 0x113   :  { %4513 = vst [vmem:[#allocation17_spill] sm:$0xff] %v4048_v32  ;;  %v4054_v13 = vadd.f32 %v336_v11, %v114_v28  ;;  %v186_v32 = vadd.f32 %v4000_v15, %v102_v22 }
 0x114   :  { %4514 = vst [vmem:[#allocation18_spill] sm:$0xff] %v4050_v49  ;;  %4515 = vst [vmem:[#allocation19_spill] sm:$0xff] %v4052_v2  ;;  %v227_v3 = vpop.f32.mrb[14].mxu0 }
 0x115   :  { %4516 = vst [vmem:[#allocation20_spill] sm:$0xff] %v4054_v13  ;;  %v4056_v14 = vadd.f32 %v227_v3, %v102_v22  ;;  %v229_v16 = vpop.f32.mrb[15].mxu0  ;;  %v340_v17 = vpop.f32.mrb[14].mxu1  ;;  %v301_v13 = vadd.f32 %v4006_v21, %v114_v28 }
 0x116   :  { %v4058_v20 = vadd.f32 %v229_v16, %v106_v23  ;;  %v4060_v27 = vadd.f32 %v340_v17, %v110_v25  ;;  %v342_v24 = vpop.f32.mrb[15].mxu1 }
 0x117   :  { %4517 = vst [vmem:[#allocation21_spill] sm:$0xff] %v4056_v14  ;;  %v4063_v29 = vadd.f32 %v342_v24, %v114_v28 }
 0x118   :  { %4518 = vst [vmem:[#allocation22_spill] sm:$0xff] %v4058_v20  ;;  %4519 = vst [vmem:[#allocation23_spill] sm:$0xff] %v4060_v27  ;;  %v607_v11 = vpop.f32.mrb[16].mxu0 }
 0x119   :  { %v655_v3 = vadd.f32 %v607_v11, %v186_v32  ;;  %v648_v14 = vpop.f32.mrb[16].mxu1  ;;  %v609_v49 = vpop.f32.mrb[17].mxu0 }
 0x11a   :  { %v657_v2 = vadd.f32 %v648_v14, %v299_v36  ;;  %v656_v16 = vadd.f32 %v609_v49, %v188_v46  ;;  %v650_v20 = vpop.f32.mrb[17].mxu1  ;;  %v611_v17 = vpop.f32.mrb[18].mxu0 }
 0x11b   :  { %v2952_v27 = vmul.f32 -1.442695, %v655_v3  ;;  %v658_v12 = vadd.f32 %v650_v20, %v301_v13  ;;  %v612_v8 = vpop.f32.mrb[19].mxu0  ;;  %v652_v15 = vpop.f32.mrb[18].mxu1 }
 0x11c   :  { %v2953_v22 = vmul.f32 -1.442695, %v656_v16  ;;  %v653_v24 = vpop.f32.mrb[19].mxu1 }
 0x11d   :  { %3364 = vpow2.f32 %v2952_v27  ;;  %v2954_v18 = vmul.f32 -1.442695, %v658_v12 }
 0x11e   :  { %3366 = vpow2.f32 %v2953_v22 }
 0x11f   :  { %3368 = vpow2.f32 %v2954_v18 }
 0x120   :  { %3370 = vtanh.f32 %v657_v2  ;;  %v4520_v2 = vmov 0  }
 0x127   :  { %v3365_v19 = vpop.eup %3364 }
 0x128   :  { %v3367_v23 = vpop.eup %3366  ;;  %v670_v25 = vadd.f32 1.0, %v3365_v19 }
 0x129   :  { %v676_v21 = vadd.f32 1.0, %v3367_v23  ;;  %v3369_v28 = vpop.eup %3368 }
 0x12a   :  { %3372 = vrcp.f32 %v670_v25  ;;  %v3371_v49 = vpop.eup %3370  ;;  %v683_v8 = vadd.f32 1.0, %v3369_v28 }
 0x12b   :  { %3374 = vrcp.f32 %v676_v21 }
 0x12c   :  { %3376 = vrcp.f32 %v683_v8 }
 0x134   :  { %v3373_v32 = vpop.eup %3372 }
 0x135   :  { %v3375_v14 = vpop.eup %3374  ;;  %v687_v13 = vmul.f32 %v3373_v32, %v3371_v49 }
 0x136   :  { %v686_v20 = vmul.f32 0.0, %v3375_v14  ;;  %v3377_v12 = vpop.eup %3376 }
 0x138   :  { %v4068_v46 = vadd.f32 %v687_v13, %v686_v20 }
 0x13a   :  { %3378 = vtanh.f32 %v4068_v46 }
 0x144   :  { %v3379_v27 = vpop.eup %3378 }
 0x145   :  { %v690_v36 = vmul.f32 %v3379_v27, %v3377_v12 }
 0x147   :  { %v695_v11 = vpack.c.bf16 %v690_v36, %v690_v36 }
 0x149   :  { %921 = vmatmul.mubr.bf16.vlgmr.msra.gmra.mrb[20].mxu0 %v695_v11  ;;  %962 = vmatmul.mubr.bf16.vlgmr.msra.gmra.mrb[20].mxu1 %v695_v11 }
 0x14a   :  { %1204 = vmatpush1.bf16.msra.mxu0 %v3743_v37  ;;  %1245 = vmatpush1.bf16.msra.mxu1 %v3749_v38 }
 0x14b   :  { %1205 = vmatprep.subr.bf16.mxu0 %v3755_v39  ;;  %1246 = vmatprep.subr.bf16.mxu1 %v3760_v40 }
 0x14c   :  { %1235 = vmatprep.mubr.bf16.mxu0 %v4520_v2  ;;  %1276 = vmatprep.mubr.bf16.mxu1 %v4520_v2 }
 0x14e   :  { %1206 = vmatpush1.bf16.msra.mxu0 %v3769_v42  ;;  %1247 = vmatpush1.bf16.msra.mxu1 %v3776_v43 }
 0x14f   :  { %1207 = vmatprep.subr.bf16.mxu0 %v3783_v44  ;;  %1248 = vmatprep.subr.bf16.mxu1 %v3789_v45 }
 0x152   :  { %1208 = vmatpush1.bf16.msra.mxu0 %v3798_v47  ;;  %1249 = vmatpush1.bf16.msra.mxu1 %v3805_v48 }
 0x153   :  { %1209 = vmatprep.subr.bf16.mxu0 %v3815_v50  ;;  %1250 = vmatprep.subr.bf16.mxu1 %v3826_v52 }
 0x156   :  { %1210 = vmatpush1.bf16.msra.mxu0 %v3821_v51  ;;  %1251 = vmatpush1.bf16.msra.mxu1 %v3832_v53 }
 0x157   :  { %1211 = vmatprep.subr.bf16.mxu0 %v3839_v54  ;;  %1252 = vmatprep.subr.bf16.mxu1 %v3844_v55 }
 0x15a   :  { %1212 = vmatpush1.bf16.msra.mxu0 %v3854_v57  ;;  %1253 = vmatpush1.bf16.msra.mxu1 %v3860_v58 }
 0x15b   :  { %1213 = vmatprep.subr.bf16.mxu0 %v3866_v59  ;;  %1254 = vmatprep.subr.bf16.mxu1 %v3873_v60 }
 0x15e   :  { %1214 = vmatpush1.bf16.msra.mxu0 %v3883_v62  ;;  %1255 = vmatpush1.bf16.msra.mxu1 %v3889_v63 }
 0x15f   :  { %1215 = vmatprep.subr.bf16.mxu0 %v3895_v0  ;;  %1256 = vmatprep.subr.bf16.mxu1 %v3902_v1 }
 0x162   :  { %1216 = vmatpush1.bf16.msra.mxu0 %v3914_v4  ;;  %1257 = vmatpush1.bf16.msra.mxu1 %v3921_v5 }
 0x163   :  { %1217 = vmatprep.subr.bf16.mxu0 %v3928_v6  ;;  %1258 = vmatprep.subr.bf16.mxu1 %v3934_v7 }
 0x166   :  { %1218 = vmatpush1.bf16.msra.mxu0 %v3943_v9  ;;  %1259 = vmatpush1.bf16.msra.mxu1 %v3950_v10 }
 0x167   :  { %1518 = vmatprep.subr.bf16.mxu0 %v3730_v34  ;;  %1559 = vmatprep.subr.bf16.mxu1 %v3735_v35 }
 0x21c   :  { %v922_v3 = vpop.f32.mrb[20].mxu0  ;;  %v963_v16 = vpop.f32.mrb[20].mxu1 }
 0x21d   :  { %v970_v17 = vadd.f32 %v922_v3, %v4008_v26  ;;  %v972_v15 = vadd.f32 %v963_v16, %v4012_v31  ;;  %v924_v22 = vpop.f32.mrb[21].mxu0  ;;  %v965_v24 = vpop.f32.mrb[21].mxu1 }
 0x21e   :  { %v971_v18 = vadd.f32 %v924_v22, %v4010_v30  ;;  %v973_v19 = vadd.f32 %v965_v24, %v4014_v33  ;;  %v926_v23 = vpop.f32.mrb[22].mxu0  ;;  %v967_v25 = vpop.f32.mrb[22].mxu1  ;;  %v4173_v22 = vld [vmem:[%s4492_s2 + $0x8] ss:$16 sps:$4 sm:$0xff]   ;;  %v4182_v24 = vld [vmem:[%s4492_s2 + $0x24] ss:$16 sps:$4 sm:$0xff]  }
 0x21f   :  { %v2987_v21 = vmul.f32 -1.442695, %v970_v17  ;;  %v927_v28 = vpop.f32.mrb[23].mxu0  ;;  %v968_v49 = vpop.f32.mrb[23].mxu1  ;;  %v4197_v23 = vld [vmem:[%s4492_s2 + $0x28] ss:$16 sps:$4 sm:$0xff]  }
 0x220   :  { %v2988_v34 = vmul.f32 -1.442695, %v971_v18  ;;  %v2989_v35 = vmul.f32 -1.442695, %v973_v19  ;;  %v4187_v18 = vld [vmem:[%s4492_s2 + $0x2c] ss:$16 sps:$4 sm:$0xff]  }
 0x221   :  { %3380 = vpow2.f32 %v2987_v21  ;;  %v4192_v19 = vld [vmem:[%s4492_s2 + $0x20] ss:$16 sps:$4 sm:$0xff]   ;;  %v4206_v25 = vld [vmem:[%s4492_s2 + $0x44] ss:$16 sps:$4 sm:$0xff]   ;;  %v4211_v21 = vld [vmem:[%s4492_s2 + $0x4c] ss:$16 sps:$4 sm:$0xff]  }
 0x222   :  { %3382 = vpow2.f32 %v2988_v34  ;;  %v4216_v28 = vld [vmem:[%s4492_s2 + $0x40] ss:$16 sps:$4 sm:$0xff]   ;;  %v4221_v49 = vld [vmem:[%s4492_s2 + $0x48] ss:$16 sps:$4 sm:$0xff]   ;;  %v4230_v34 = vld [vmem:[%s4492_s2 + $0x64] ss:$16 sps:$4 sm:$0xff]  }
 0x223   :  { %3384 = vpow2.f32 %v2989_v35  ;;  %v4235_v35 = vld [vmem:[%s4492_s2 + $0x6c] ss:$16 sps:$4 sm:$0xff]  }
 0x224   :  { %3386 = vtanh.f32 %v972_v15  ;;  %v4168_v15 = vld [vmem:[%s4492_s2] ss:$16 sps:$4 sm:$0xff]  }
 0x22b   :  { %v3381_v32 = vpop.eup %3380 }
 0x22c   :  { %v3383_v14 = vpop.eup %3382  ;;  %v985_v26 = vadd.f32 1.0, %v3381_v32  ;;  %v4240_v32 = vld [vmem:[%s4492_s2 + $0x60] ss:$16 sps:$4 sm:$0xff]  }
 0x22d   :  { %v991_v31 = vadd.f32 1.0, %v3383_v14  ;;  %v3385_v30 = vpop.eup %3384  ;;  %v4245_v14 = vld [vmem:[%s4492_s2 + $0x68] ss:$16 sps:$4 sm:$0xff]  }
 0x22e   :  { %3388 = vrcp.f32 %v985_v26  ;;  %v3387_v13 = vpop.eup %3386  ;;  %v998_v12 = vadd.f32 1.0, %v3385_v30  ;;  %v4254_v26 = vld [vmem:[%s4492_s2 + $0x80] ss:$16 sps:$4 sm:$0xff]   ;;  %v4264_v30 = vld [vmem:[%s4492_s2 + $0x88] ss:$16 sps:$4 sm:$0xff]  }
 0x22f   :  { %3390 = vrcp.f32 %v991_v31  ;;  %v4259_v31 = vld [vmem:[%s4492_s2 + $0x84] ss:$16 sps:$4 sm:$0xff]  }
 0x230   :  { %3392 = vrcp.f32 %v998_v12  ;;  %v4294_v12 = vld [vmem:[%s4492_s2 + $0xa8] ss:$16 sps:$4 sm:$0xff]  }
 0x238   :  { %v3389_v33 = vpop.eup %3388 }
 0x239   :  { %v3391_v8 = vpop.eup %3390  ;;  %v1002_v20 = vmul.f32 %v3389_v33, %v3387_v13  ;;  %v4269_v13 = vld [vmem:[%s4492_s2 + $0x8c] ss:$16 sps:$4 sm:$0xff]   ;;  %v4274_v33 = vld [vmem:[%s4492_s2 + $0xa4] ss:$16 sps:$4 sm:$0xff]  }
 0x23a   :  { %v1001_v27 = vmul.f32 %v3391_v8, %v4068_v46  ;;  %v3393_v11 = vpop.eup %3392  ;;  %v4163_v46 = vld [vmem:[%s4492_s2 + $0xc] ss:$16 sps:$4 sm:$0xff]  }
 0x23b   :  { %v4280_v8 = vld [vmem:[%s4492_s2 + $0xac] ss:$16 sps:$4 sm:$0xff]  }
 0x23c   :  { %v4110_v36 = vadd.f32 %v1002_v20, %v1001_v27  ;;  %v4287_v20 = vld [vmem:[%s4492_s2 + $0xa0] ss:$16 sps:$4 sm:$0xff]   ;;  %v4299_v27 = vld [vmem:[%s4492_s2 + $0xc4] ss:$16 sps:$4 sm:$0xff]  }
 0x23e   :  { %3394 = vtanh.f32 %v4110_v36 }
 0x248   :  { %v3395_v3 = vpop.eup %3394 }
 0x249   :  { %v1005_v16 = vmul.f32 %v3395_v3, %v3393_v11  ;;  %v4311_v11 = vld [vmem:[%s4492_s2 + $0xc0] ss:$16 sps:$4 sm:$0xff]   ;;  %v4318_v3 = vld [vmem:[%s4492_s2 + $0xc8] ss:$16 sps:$4 sm:$0xff]  }
 0x24b   :  { %v1010_v17 = vpack.c.bf16 %v1005_v16, %v1005_v16  ;;  %v4323_v16 = vld [vmem:[%s4492_s2 + $0xe4] ss:$16 sps:$4 sm:$0xff]  }
 0x24d   :  { %1236 = vmatmul.mubr.bf16.vlgmr.msra.gmra.mrb[24].mxu0 %v1010_v17  ;;  %1277 = vmatmul.mubr.bf16.vlgmr.msra.gmra.mrb[24].mxu1 %v1010_v17  ;;  %v4329_v17 = vld [vmem:[%s4492_s2 + $0xec] ss:$16 sps:$4 sm:$0xff]  }
 0x24e   :  { %1519 = vmatpush1.bf16.msra.mxu0 %v3743_v37  ;;  %1560 = vmatpush1.bf16.msra.mxu1 %v3749_v38 }
 0x24f   :  { %1520 = vmatprep.subr.bf16.mxu0 %v3755_v39  ;;  %1561 = vmatprep.subr.bf16.mxu1 %v3760_v40 }
 0x250   :  { %1550 = vmatprep.mubr.bf16.mxu0 %v4520_v2  ;;  %1591 = vmatprep.mubr.bf16.mxu1 %v4520_v2 }
 0x252   :  { %1521 = vmatpush1.bf16.msra.mxu0 %v3769_v42  ;;  %1562 = vmatpush1.bf16.msra.mxu1 %v3776_v43 }
 0x253   :  { %1522 = vmatprep.subr.bf16.mxu0 %v3783_v44  ;;  %1563 = vmatprep.subr.bf16.mxu1 %v3789_v45  ;;  %v4521_v45 = vld [vmem:[#allocation4_spill] sm:$0xff] }
 0x256   :  { %1523 = vmatpush1.bf16.msra.mxu0 %v3798_v47  ;;  %1564 = vmatpush1.bf16.msra.mxu1 %v3805_v48 }
 0x257   :  { %1524 = vmatprep.subr.bf16.mxu0 %v3815_v50  ;;  %1565 = vmatprep.subr.bf16.mxu1 %v3826_v52 }
 0x25a   :  { %1525 = vmatpush1.bf16.msra.mxu0 %v3821_v51  ;;  %1566 = vmatpush1.bf16.msra.mxu1 %v3832_v53 }
 0x25b   :  { %1526 = vmatprep.subr.bf16.mxu0 %v3839_v54  ;;  %1567 = vmatprep.subr.bf16.mxu1 %v3844_v55 }
 0x25e   :  { %1527 = vmatpush1.bf16.msra.mxu0 %v3854_v57  ;;  %1568 = vmatpush1.bf16.msra.mxu1 %v3860_v58 }
 0x25f   :  { %1528 = vmatprep.subr.bf16.mxu0 %v3866_v59  ;;  %1569 = vmatprep.subr.bf16.mxu1 %v3873_v60 }
 0x262   :  { %1529 = vmatpush1.bf16.msra.mxu0 %v3883_v62  ;;  %1570 = vmatpush1.bf16.msra.mxu1 %v3889_v63 }
 0x263   :  { %1530 = vmatprep.subr.bf16.mxu0 %v3895_v0  ;;  %1571 = vmatprep.subr.bf16.mxu1 %v3902_v1 }
 0x266   :  { %1531 = vmatpush1.bf16.msra.mxu0 %v3914_v4  ;;  %1572 = vmatpush1.bf16.msra.mxu1 %v3921_v5 }
 0x267   :  { %1532 = vmatprep.subr.bf16.mxu0 %v3928_v6  ;;  %1573 = vmatprep.subr.bf16.mxu1 %v3934_v7 }
 0x26a   :  { %1533 = vmatpush1.bf16.msra.mxu0 %v3943_v9  ;;  %1574 = vmatpush1.bf16.msra.mxu1 %v3950_v10 }
 0x26b   :  { %1874 = vmatprep.subr.bf16.mxu1 %v4163_v46 }
 0x320   :  { %v1237_v37 = vpop.f32.mrb[24].mxu0  ;;  %v1278_v38 = vpop.f32.mrb[24].mxu1 }
 0x321   :  { %v1285_v39 = vadd.f32 %v1237_v37, %v4016_v41  ;;  %v1287_v40 = vadd.f32 %v1278_v38, %v4020_v61  ;;  %v1239_v42 = vpop.f32.mrb[25].mxu0  ;;  %v1280_v43 = vpop.f32.mrb[25].mxu1  ;;  %v4158_v61 = vld [vmem:[%s4492_s2 + $0x4] ss:$16 sps:$4 sm:$0xff]   ;;  %v4335_v37 = vld [vmem:[%s4492_s2 + $0xe0] ss:$16 sps:$4 sm:$0xff]  }
 0x322   :  { %v1286_v44 = vadd.f32 %v1239_v42, %v4018_v56  ;;  %v1288_v47 = vadd.f32 %v1280_v43, %v4521_v45  ;;  %v1241_v48 = vpop.f32.mrb[26].mxu0  ;;  %v1282_v50 = vpop.f32.mrb[26].mxu1  ;;  %1833 = vmatprep.subr.bf16.mxu0 %v4158_v61  ;;  %v4342_v38 = vld [vmem:[%s4492_s2 + $0xe8] ss:$16 sps:$4 sm:$0xff]  }
 0x323   :  { %v3022_v51 = vmul.f32 -1.442695, %v1285_v39  ;;  %v1242_v52 = vpop.f32.mrb[27].mxu0  ;;  %v1283_v53 = vpop.f32.mrb[27].mxu1  ;;  %v4522_v42 = vld [vmem:[#allocation5_spill] sm:$0xff]  ;;  %v4524_v50 = vld [vmem:[#allocation6_spill] sm:$0xff] }
 0x324   :  { %v3023_v54 = vmul.f32 -1.442695, %v1286_v44  ;;  %v3024_v55 = vmul.f32 -1.442695, %v1288_v47  ;;  %v4523_v44 = vld [vmem:[#allocation7_spill] sm:$0xff]  ;;  %v4525_v52 = vld [vmem:[#allocation8_spill] sm:$0xff] }
 0x325   :  { %3396 = vpow2.f32 %v3022_v51 }
 0x326   :  { %3398 = vpow2.f32 %v3023_v54 }
 0x327   :  { %3400 = vpow2.f32 %v3024_v55 }
 0x328   :  { %3402 = vtanh.f32 %v1287_v40 }
 0x32f   :  { %v3397_v57 = vpop.eup %3396 }
 0x330   :  { %v3399_v58 = vpop.eup %3398  ;;  %v1300_v59 = vadd.f32 1.0, %v3397_v57 }
 0x331   :  { %v1306_v60 = vadd.f32 1.0, %v3399_v58  ;;  %v3401_v62 = vpop.eup %3400 }
 0x332   :  { %3404 = vrcp.f32 %v1300_v59  ;;  %v3403_v63 = vpop.eup %3402  ;;  %v1313_v5 = vadd.f32 1.0, %v3401_v62 }
 0x333   :  { %3406 = vrcp.f32 %v1306_v60 }
 0x334   :  { %3408 = vrcp.f32 %v1313_v5 }
 0x33c   :  { %v3405_v0 = vpop.eup %3404 }
 0x33d   :  { %v3407_v1 = vpop.eup %3406  ;;  %v1317_v4 = vmul.f32 %v3405_v0, %v3403_v63 }
 0x33e   :  { %v1316_v6 = vmul.f32 %v3407_v1, %v4110_v36  ;;  %v3409_v9 = vpop.eup %3408  ;;  %v4305_v36 = vld [vmem:[%s4492_s2 + $0xcc] ss:$16 sps:$4 sm:$0xff]  }
 0x340   :  { %v4150_v7 = vadd.f32 %v1317_v4, %v1316_v6 }
 0x342   :  { %3410 = vtanh.f32 %v4150_v7 }
 0x34c   :  { %v3411_v10 = vpop.eup %3410 }
 0x34d   :  { %v1320_v41 = vmul.f32 %v3411_v10, %v3409_v9 }
 0x34f   :  { %v1325_v56 = vpack.c.bf16 %v1320_v41, %v1320_v41 }
 0x351   :  { %1551 = vmatmul.mubr.bf16.vlgmr.msra.gmra.mrb[28].mxu0 %v1325_v56  ;;  %1592 = vmatmul.mubr.bf16.vlgmr.msra.gmra.mrb[28].mxu1 %v1325_v56 }
 0x352   :  { %1865 = vmatprep.mubr.bf16.mxu0 %v4520_v2  ;;  %1906 = vmatprep.mubr.bf16.mxu1 %v4520_v2 }
 0x353   :  { %1834 = vmatpush1.bf16.msra.mxu0 %v4168_v15  ;;  %1875 = vmatpush1.bf16.msra.mxu1 %v4173_v22 }
 0x354   :  { %1835 = vmatprep.subr.bf16.mxu0 %v4182_v24  ;;  %1876 = vmatprep.subr.bf16.mxu1 %v4187_v18 }
 0x357   :  { %1836 = vmatpush1.bf16.msra.mxu0 %v4192_v19  ;;  %1877 = vmatpush1.bf16.msra.mxu1 %v4197_v23 }
 0x358   :  { %1837 = vmatprep.subr.bf16.mxu0 %v4206_v25  ;;  %1878 = vmatprep.subr.bf16.mxu1 %v4211_v21 }
 0x35b   :  { %1838 = vmatpush1.bf16.msra.mxu0 %v4216_v28  ;;  %1879 = vmatpush1.bf16.msra.mxu1 %v4221_v49 }
 0x35c   :  { %1839 = vmatprep.subr.bf16.mxu0 %v4230_v34  ;;  %1880 = vmatprep.subr.bf16.mxu1 %v4235_v35 }
 0x35f   :  { %1840 = vmatpush1.bf16.msra.mxu0 %v4240_v32  ;;  %1881 = vmatpush1.bf16.msra.mxu1 %v4245_v14 }
 0x360   :  { %1841 = vmatprep.subr.bf16.mxu0 %v4259_v31  ;;  %1882 = vmatprep.subr.bf16.mxu1 %v4269_v13 }
 0x363   :  { %1842 = vmatpush1.bf16.msra.mxu0 %v4254_v26  ;;  %1883 = vmatpush1.bf16.msra.mxu1 %v4264_v30 }
 0x364   :  { %1843 = vmatprep.subr.bf16.mxu0 %v4274_v33  ;;  %1884 = vmatprep.subr.bf16.mxu1 %v4280_v8 }
 0x367   :  { %1844 = vmatpush1.bf16.msra.mxu0 %v4287_v20  ;;  %1885 = vmatpush1.bf16.msra.mxu1 %v4294_v12 }
 0x368   :  { %1845 = vmatprep.subr.bf16.mxu0 %v4299_v27  ;;  %1886 = vmatprep.subr.bf16.mxu1 %v4305_v36 }
 0x36b   :  { %1846 = vmatpush1.bf16.msra.mxu0 %v4311_v11  ;;  %1887 = vmatpush1.bf16.msra.mxu1 %v4318_v3 }
 0x36c   :  { %1847 = vmatprep.subr.bf16.mxu0 %v4323_v16  ;;  %1888 = vmatprep.subr.bf16.mxu1 %v4329_v17 }
 0x36f   :  { %1848 = vmatpush1.bf16.msra.mxu0 %v4335_v37  ;;  %1889 = vmatpush1.bf16.msra.mxu1 %v4342_v38 }
 0x370   :  { %2148 = vmatprep.subr.bf16.mxu0 %v4158_v61  ;;  %2189 = vmatprep.subr.bf16.mxu1 %v4163_v46 }
 0x424   :  { %v1552_v39 = vpop.f32.mrb[28].mxu0  ;;  %v1593_v40 = vpop.f32.mrb[28].mxu1 }
 0x425   :  { %v1600_v43 = vadd.f32 %v1552_v39, %v4522_v42  ;;  %v1602_v45 = vadd.f32 %v1593_v40, %v4523_v44  ;;  %v1554_v47 = vpop.f32.mrb[29].mxu0  ;;  %v1595_v48 = vpop.f32.mrb[29].mxu1 }
 0x426   :  { %v1601_v51 = vadd.f32 %v1554_v47, %v4524_v50  ;;  %v1603_v53 = vadd.f32 %v1595_v48, %v4525_v52  ;;  %v1556_v54 = vpop.f32.mrb[30].mxu0  ;;  %v1597_v55 = vpop.f32.mrb[30].mxu1  ;;  %v4526_v48 = vld [vmem:[#allocation9_spill] sm:$0xff] }
 0x427   :  { %v3057_v57 = vmul.f32 -1.442695, %v1600_v43  ;;  %v1557_v58 = vpop.f32.mrb[31].mxu0  ;;  %v1598_v59 = vpop.f32.mrb[31].mxu1  ;;  %v4528_v55 = vld [vmem:[#allocation10_spill] sm:$0xff] }
 0x428   :  { %v3058_v60 = vmul.f32 -1.442695, %v1601_v51  ;;  %v3059_v62 = vmul.f32 -1.442695, %v1603_v53  ;;  %v4527_v51 = vld [vmem:[#allocation11_spill] sm:$0xff]  ;;  %v4529_v58 = vld [vmem:[#allocation12_spill] sm:$0xff] }
 0x429   :  { %3412 = vpow2.f32 %v3057_v57 }
 0x42a   :  { %3414 = vpow2.f32 %v3058_v60 }
 0x42b   :  { %3416 = vpow2.f32 %v3059_v62 }
 0x42c   :  { %3418 = vtanh.f32 %v1602_v45 }
 0x433   :  { %v3413_v63 = vpop.eup %3412 }
 0x434   :  { %v3415_v0 = vpop.eup %3414  ;;  %v1615_v1 = vadd.f32 1.0, %v3413_v63 }
 0x435   :  { %v1621_v4 = vadd.f32 1.0, %v3415_v0  ;;  %v3417_v5 = vpop.eup %3416 }
 0x436   :  { %3420 = vrcp.f32 %v1615_v1  ;;  %v3419_v6 = vpop.eup %3418  ;;  %v1628_v56 = vadd.f32 1.0, %v3417_v5 }
 0x437   :  { %3422 = vrcp.f32 %v1621_v4 }
 0x438   :  { %3424 = vrcp.f32 %v1628_v56 }
 0x440   :  { %v3421_v9 = vpop.eup %3420 }
 0x441   :  { %v3423_v10 = vpop.eup %3422  ;;  %v1632_v41 = vmul.f32 %v3421_v9, %v3419_v6 }
 0x442   :  { %v1631_v39 = vmul.f32 %v3423_v10, %v4150_v7  ;;  %v3425_v42 = vpop.eup %3424 }
 0x444   :  { %v4354_v40 = vadd.f32 %v1632_v41, %v1631_v39 }
 0x446   :  { %3426 = vtanh.f32 %v4354_v40 }
 0x450   :  { %v3427_v43 = vpop.eup %3426 }
 0x451   :  { %v1635_v44 = vmul.f32 %v3427_v43, %v3425_v42 }
 0x453   :  { %v1640_v45 = vpack.c.bf16 %v1635_v44, %v1635_v44 }
 0x455   :  { %1866 = vmatmul.mubr.bf16.vlgmr.msra.gmra.mrb[32].mxu0 %v1640_v45  ;;  %1907 = vmatmul.mubr.bf16.vlgmr.msra.gmra.mrb[32].mxu1 %v1640_v45 }
 0x456   :  { %2149 = vmatpush1.bf16.msra.mxu0 %v4168_v15  ;;  %2190 = vmatpush1.bf16.msra.mxu1 %v4173_v22 }
 0x457   :  { %2150 = vmatprep.subr.bf16.mxu0 %v4182_v24  ;;  %2191 = vmatprep.subr.bf16.mxu1 %v4187_v18 }
 0x458   :  { %2180 = vmatprep.mubr.bf16.mxu0 %v4520_v2  ;;  %2221 = vmatprep.mubr.bf16.mxu1 %v4520_v2 }
 0x45a   :  { %2151 = vmatpush1.bf16.msra.mxu0 %v4192_v19  ;;  %2192 = vmatpush1.bf16.msra.mxu1 %v4197_v23 }
 0x45b   :  { %2152 = vmatprep.subr.bf16.mxu0 %v4206_v25  ;;  %2193 = vmatprep.subr.bf16.mxu1 %v4211_v21 }
 0x45e   :  { %2153 = vmatpush1.bf16.msra.mxu0 %v4216_v28  ;;  %2194 = vmatpush1.bf16.msra.mxu1 %v4221_v49 }
 0x45f   :  { %2154 = vmatprep.subr.bf16.mxu0 %v4230_v34  ;;  %2195 = vmatprep.subr.bf16.mxu1 %v4235_v35 }
 0x462   :  { %2155 = vmatpush1.bf16.msra.mxu0 %v4240_v32  ;;  %2196 = vmatpush1.bf16.msra.mxu1 %v4245_v14 }
 0x463   :  { %2156 = vmatprep.subr.bf16.mxu0 %v4259_v31  ;;  %2197 = vmatprep.subr.bf16.mxu1 %v4269_v13 }
 0x466   :  { %2157 = vmatpush1.bf16.msra.mxu0 %v4254_v26  ;;  %2198 = vmatpush1.bf16.msra.mxu1 %v4264_v30 }
 0x467   :  { %2158 = vmatprep.subr.bf16.mxu0 %v4274_v33  ;;  %2199 = vmatprep.subr.bf16.mxu1 %v4280_v8 }
 0x46a   :  { %2159 = vmatpush1.bf16.msra.mxu0 %v4287_v20  ;;  %2200 = vmatpush1.bf16.msra.mxu1 %v4294_v12 }
 0x46b   :  { %2160 = vmatprep.subr.bf16.mxu0 %v4299_v27  ;;  %2201 = vmatprep.subr.bf16.mxu1 %v4305_v36 }
 0x46e   :  { %2161 = vmatpush1.bf16.msra.mxu0 %v4311_v11  ;;  %2202 = vmatpush1.bf16.msra.mxu1 %v4318_v3 }
 0x46f   :  { %2162 = vmatprep.subr.bf16.mxu0 %v4323_v16  ;;  %2203 = vmatprep.subr.bf16.mxu1 %v4329_v17 }
 0x472   :  { %2163 = vmatpush1.bf16.msra.mxu0 %v4335_v37  ;;  %2204 = vmatpush1.bf16.msra.mxu1 %v4342_v38 }
 0x473   :  { %2463 = vmatprep.subr.bf16.mxu0 %v4158_v61  ;;  %2504 = vmatprep.subr.bf16.mxu1 %v4163_v46 }
 0x528   :  { %v1867_v7 = vpop.f32.mrb[32].mxu0  ;;  %v1908_v47 = vpop.f32.mrb[32].mxu1 }
 0x529   :  { %v1915_v50 = vadd.f32 %v1867_v7, %v4526_v48  ;;  %v1917_v52 = vadd.f32 %v1908_v47, %v4527_v51  ;;  %v1869_v53 = vpop.f32.mrb[33].mxu0  ;;  %v1910_v54 = vpop.f32.mrb[33].mxu1 }
 0x52a   :  { %v1916_v57 = vadd.f32 %v1869_v53, %v4528_v55  ;;  %v1918_v59 = vadd.f32 %v1910_v54, %v4529_v58  ;;  %v1871_v60 = vpop.f32.mrb[34].mxu0  ;;  %v1912_v62 = vpop.f32.mrb[34].mxu1  ;;  %v4530_v54 = vld [vmem:[#allocation13_spill] sm:$0xff] }
 0x52b   :  { %v3092_v63 = vmul.f32 -1.442695, %v1915_v50  ;;  %v1872_v0 = vpop.f32.mrb[35].mxu0  ;;  %v1913_v1 = vpop.f32.mrb[35].mxu1  ;;  %v4532_v62 = vld [vmem:[#allocation14_spill] sm:$0xff] }
 0x52c   :  { %v3093_v4 = vmul.f32 -1.442695, %v1916_v57  ;;  %v3094_v5 = vmul.f32 -1.442695, %v1918_v59  ;;  %v4531_v57 = vld [vmem:[#allocation15_spill] sm:$0xff]  ;;  %v4533_v0 = vld [vmem:[#allocation16_spill] sm:$0xff] }
 0x52d   :  { %3428 = vpow2.f32 %v3092_v63 }
 0x52e   :  { %3430 = vpow2.f32 %v3093_v4 }
 0x52f   :  { %3432 = vpow2.f32 %v3094_v5 }
 0x530   :  { %3434 = vtanh.f32 %v1917_v52 }
 0x537   :  { %v3429_v6 = vpop.eup %3428 }
 0x538   :  { %v3431_v9 = vpop.eup %3430  ;;  %v1930_v10 = vadd.f32 1.0, %v3429_v6 }
 0x539   :  { %v1936_v41 = vadd.f32 1.0, %v3431_v9  ;;  %v3433_v56 = vpop.eup %3432 }
 0x53a   :  { %3436 = vrcp.f32 %v1930_v10  ;;  %v3435_v39 = vpop.eup %3434  ;;  %v1943_v45 = vadd.f32 1.0, %v3433_v56 }
 0x53b   :  { %3438 = vrcp.f32 %v1936_v41 }
 0x53c   :  { %3440 = vrcp.f32 %v1943_v45 }
 0x544   :  { %v3437_v42 = vpop.eup %3436 }
 0x545   :  { %v3439_v43 = vpop.eup %3438  ;;  %v1947_v44 = vmul.f32 %v3437_v42, %v3435_v39 }
 0x546   :  { %v1946_v7 = vmul.f32 %v3439_v43, %v4354_v40  ;;  %v3441_v48 = vpop.eup %3440 }
 0x548   :  { %v4396_v47 = vadd.f32 %v1947_v44, %v1946_v7 }
 0x54a   :  { %3442 = vtanh.f32 %v4396_v47 }
 0x554   :  { %v3443_v50 = vpop.eup %3442 }
 0x555   :  { %v1950_v51 = vmul.f32 %v3443_v50, %v3441_v48 }
 0x557   :  { %v1955_v52 = vpack.c.bf16 %v1950_v51, %v1950_v51 }
 0x559   :  { %2181 = vmatmul.mubr.bf16.vlgmr.msra.gmra.mrb[36].mxu0 %v1955_v52  ;;  %2222 = vmatmul.mubr.bf16.vlgmr.msra.gmra.mrb[36].mxu1 %v1955_v52 }
 0x55a   :  { %2464 = vmatpush1.bf16.msra.mxu0 %v4168_v15  ;;  %2505 = vmatpush1.bf16.msra.mxu1 %v4173_v22 }
 0x55b   :  { %2465 = vmatprep.subr.bf16.mxu0 %v4182_v24  ;;  %2506 = vmatprep.subr.bf16.mxu1 %v4187_v18 }
 0x55c   :  { %2495 = vmatprep.mubr.bf16.mxu0 %v4520_v2  ;;  %2536 = vmatprep.mubr.bf16.mxu1 %v4520_v2 }
 0x55e   :  { %2466 = vmatpush1.bf16.msra.mxu0 %v4192_v19  ;;  %2507 = vmatpush1.bf16.msra.mxu1 %v4197_v23 }
 0x55f   :  { %2467 = vmatprep.subr.bf16.mxu0 %v4206_v25  ;;  %2508 = vmatprep.subr.bf16.mxu1 %v4211_v21 }
 0x562   :  { %2468 = vmatpush1.bf16.msra.mxu0 %v4216_v28  ;;  %2509 = vmatpush1.bf16.msra.mxu1 %v4221_v49 }
 0x563   :  { %2469 = vmatprep.subr.bf16.mxu0 %v4230_v34  ;;  %2510 = vmatprep.subr.bf16.mxu1 %v4235_v35 }
 0x566   :  { %2470 = vmatpush1.bf16.msra.mxu0 %v4240_v32  ;;  %2511 = vmatpush1.bf16.msra.mxu1 %v4245_v14 }
 0x567   :  { %2471 = vmatprep.subr.bf16.mxu0 %v4259_v31  ;;  %2512 = vmatprep.subr.bf16.mxu1 %v4269_v13 }
 0x56a   :  { %2472 = vmatpush1.bf16.msra.mxu0 %v4254_v26  ;;  %2513 = vmatpush1.bf16.msra.mxu1 %v4264_v30 }
 0x56b   :  { %2473 = vmatprep.subr.bf16.mxu0 %v4274_v33  ;;  %2514 = vmatprep.subr.bf16.mxu1 %v4280_v8 }
 0x56e   :  { %2474 = vmatpush1.bf16.msra.mxu0 %v4287_v20  ;;  %2515 = vmatpush1.bf16.msra.mxu1 %v4294_v12 }
 0x56f   :  { %2475 = vmatprep.subr.bf16.mxu0 %v4299_v27  ;;  %2516 = vmatprep.subr.bf16.mxu1 %v4305_v36 }
 0x572   :  { %2476 = vmatpush1.bf16.msra.mxu0 %v4311_v11  ;;  %2517 = vmatpush1.bf16.msra.mxu1 %v4318_v3 }
 0x573   :  { %2477 = vmatprep.subr.bf16.mxu0 %v4323_v16  ;;  %2518 = vmatprep.subr.bf16.mxu1 %v4329_v17 }
 0x576   :  { %2478 = vmatpush1.bf16.msra.mxu0 %v4335_v37  ;;  %2519 = vmatpush1.bf16.msra.mxu1 %v4342_v38 }
 0x577   :  { %2778 = vmatprep.subr.bf16.mxu0 %v4158_v61  ;;  %2819 = vmatprep.subr.bf16.mxu1 %v4163_v46 }
 0x62c   :  { %v2182_v40 = vpop.f32.mrb[36].mxu0  ;;  %v2223_v53 = vpop.f32.mrb[36].mxu1 }
 0x62d   :  { %v2230_v55 = vadd.f32 %v2182_v40, %v4530_v54  ;;  %v2232_v58 = vadd.f32 %v2223_v53, %v4531_v57  ;;  %v2184_v59 = vpop.f32.mrb[37].mxu0  ;;  %v2225_v60 = vpop.f32.mrb[37].mxu1 }
 0x62e   :  { %v2231_v63 = vadd.f32 %v2184_v59, %v4532_v62  ;;  %v2233_v1 = vadd.f32 %v2225_v60, %v4533_v0  ;;  %v2186_v4 = vpop.f32.mrb[38].mxu0  ;;  %v2227_v5 = vpop.f32.mrb[38].mxu1 }
 0x62f   :  { %v3127_v6 = vmul.f32 -1.442695, %v2230_v55  ;;  %v2187_v9 = vpop.f32.mrb[39].mxu0  ;;  %v2228_v10 = vpop.f32.mrb[39].mxu1 }
 0x630   :  { %v3128_v61 = vmul.f32 -1.442695, %v2231_v63  ;;  %v3129_v46 = vmul.f32 -1.442695, %v2233_v1  ;;  %v4538_v63 = vld [vmem:[#allocation21_spill] sm:$0xff]  ;;  %v4539_v1 = vld [vmem:[#allocation23_spill] sm:$0xff] }
 0x631   :  { %3444 = vpow2.f32 %v3127_v6  ;;  %v4540_v9 = vld [vmem:[#allocation22_spill] sm:$0xff] }
 0x632   :  { %3446 = vpow2.f32 %v3128_v61 }
 0x633   :  { %3448 = vpow2.f32 %v3129_v46 }
 0x634   :  { %3450 = vtanh.f32 %v2232_v58 }
 0x63b   :  { %v3445_v41 = vpop.eup %3444 }
 0x63c   :  { %v3447_v56 = vpop.eup %3446  ;;  %v2245_v39 = vadd.f32 1.0, %v3445_v41 }
 0x63d   :  { %v2251_v42 = vadd.f32 1.0, %v3447_v56  ;;  %v3449_v43 = vpop.eup %3448 }
 0x63e   :  { %3452 = vrcp.f32 %v2245_v39  ;;  %v3451_v44 = vpop.eup %3450  ;;  %v2258_v50 = vadd.f32 1.0, %v3449_v43 }
 0x63f   :  { %3454 = vrcp.f32 %v2251_v42 }
 0x640   :  { %3456 = vrcp.f32 %v2258_v50 }
 0x648   :  { %v3453_v45 = vpop.eup %3452 }
 0x649   :  { %v3455_v7 = vpop.eup %3454  ;;  %v2262_v48 = vmul.f32 %v3453_v45, %v3451_v44 }
 0x64a   :  { %v2261_v51 = vmul.f32 %v3455_v7, %v4396_v47  ;;  %v3457_v40 = vpop.eup %3456 }
 0x64c   :  { %v4438_v52 = vadd.f32 %v2262_v48, %v2261_v51 }
 0x64e   :  { %3458 = vtanh.f32 %v4438_v52 }
 0x658   :  { %v3459_v53 = vpop.eup %3458 }
 0x659   :  { %v2265_v54 = vmul.f32 %v3459_v53, %v3457_v40 }
 0x65b   :  { %v2270_v55 = vpack.c.bf16 %v2265_v54, %v2265_v54 }
 0x65d   :  { %2496 = vmatmul.mubr.bf16.vlgmr.msra.gmra.mrb[40].mxu0 %v2270_v55  ;;  %2537 = vmatmul.mubr.bf16.vlgmr.msra.gmra.mrb[40].mxu1 %v2270_v55 }
 0x65e   :  { %2779 = vmatpush1.bf16.msra.mxu0 %v4168_v15  ;;  %2820 = vmatpush1.bf16.msra.mxu1 %v4173_v22  ;;  %v4534_v22 = vld [vmem:[#allocation17_spill] sm:$0xff] }
 0x65f   :  { %2780 = vmatprep.subr.bf16.mxu0 %v4182_v24  ;;  %2821 = vmatprep.subr.bf16.mxu1 %v4187_v18  ;;  %v4535_v18 = vld [vmem:[#allocation19_spill] sm:$0xff] }
 0x660   :  { %2810 = vmatprep.mubr.bf16.mxu0 %v4520_v2  ;;  %2851 = vmatprep.mubr.bf16.mxu1 %v4520_v2 }
 0x662   :  { %2781 = vmatpush1.bf16.msra.mxu0 %v4192_v19  ;;  %2822 = vmatpush1.bf16.msra.mxu1 %v4197_v23 }
 0x663   :  { %2782 = vmatprep.subr.bf16.mxu0 %v4206_v25  ;;  %2823 = vmatprep.subr.bf16.mxu1 %v4211_v21  ;;  %v4536_v21 = vld [vmem:[#allocation18_spill] sm:$0xff] }
 0x666   :  { %2783 = vmatpush1.bf16.msra.mxu0 %v4216_v28  ;;  %2824 = vmatpush1.bf16.msra.mxu1 %v4221_v49  ;;  %v4537_v49 = vld [vmem:[#allocation20_spill] sm:$0xff] }
 0x667   :  { %2784 = vmatprep.subr.bf16.mxu0 %v4230_v34  ;;  %2825 = vmatprep.subr.bf16.mxu1 %v4235_v35 }
 0x66a   :  { %2785 = vmatpush1.bf16.msra.mxu0 %v4240_v32  ;;  %2826 = vmatpush1.bf16.msra.mxu1 %v4245_v14 }
 0x66b   :  { %2786 = vmatprep.subr.bf16.mxu0 %v4259_v31  ;;  %2827 = vmatprep.subr.bf16.mxu1 %v4269_v13 }
 0x66e   :  { %2787 = vmatpush1.bf16.msra.mxu0 %v4254_v26  ;;  %2828 = vmatpush1.bf16.msra.mxu1 %v4264_v30 }
 0x66f   :  { %2788 = vmatprep.subr.bf16.mxu0 %v4274_v33  ;;  %2829 = vmatprep.subr.bf16.mxu1 %v4280_v8 }
 0x672   :  { %2789 = vmatpush1.bf16.msra.mxu0 %v4287_v20  ;;  %2830 = vmatpush1.bf16.msra.mxu1 %v4294_v12 }
 0x673   :  { %2790 = vmatprep.subr.bf16.mxu0 %v4299_v27  ;;  %2831 = vmatprep.subr.bf16.mxu1 %v4305_v36 }
 0x676   :  { %2791 = vmatpush1.bf16.msra.mxu0 %v4311_v11  ;;  %2832 = vmatpush1.bf16.msra.mxu1 %v4318_v3 }
 0x677   :  { %2792 = vmatprep.subr.bf16.mxu0 %v4323_v16  ;;  %2833 = vmatprep.subr.bf16.mxu1 %v4329_v17 }
 0x67a   :  { %2793 = vmatpush1.bf16.msra.mxu0 %v4335_v37  ;;  %2834 = vmatpush1.bf16.msra.mxu1 %v4342_v38 }
 0x730   :  { %v2497_v2 = vpop.f32.mrb[40].mxu0  ;;  %v2538_v15 = vpop.f32.mrb[40].mxu1 }
 0x731   :  { %v2545_v24 = vadd.f32 %v2497_v2, %v4534_v22  ;;  %v2547_v19 = vadd.f32 %v2538_v15, %v4535_v18  ;;  %v2499_v23 = vpop.f32.mrb[41].mxu0  ;;  %v2540_v25 = vpop.f32.mrb[41].mxu1 }
 0x732   :  { %v2546_v28 = vadd.f32 %v2499_v23, %v4536_v21  ;;  %v2548_v34 = vadd.f32 %v2540_v25, %v4537_v49  ;;  %v2501_v35 = vpop.f32.mrb[42].mxu0  ;;  %v2542_v32 = vpop.f32.mrb[42].mxu1  ;;  %v2907_v23 = vstv %s4496_s5 }
 0x733   :  { %v3162_v14 = vmul.f32 -1.442695, %v2545_v24  ;;  %v2502_v26 = vpop.f32.mrb[43].mxu0  ;;  %v2543_v31 = vpop.f32.mrb[43].mxu1  ;;  %v3200_v24 = vld [vmem:[%s4495_s4] ss:$0 sm:$0xff] }
 0x734   :  { %v3163_v30 = vmul.f32 -1.442695, %v2546_v28  ;;  %v3164_v13 = vmul.f32 -1.442695, %v2548_v34 }
 0x735   :  { %3460 = vpow2.f32 %v3162_v14 }
 0x736   :  { %3462 = vpow2.f32 %v3163_v30 }
 0x737   :  { %3464 = vpow2.f32 %v3164_v13 }
 0x738   :  { %3466 = vtanh.f32 %v2547_v19 }
 0x73f   :  { %v3461_v33 = vpop.eup %3460 }
 0x740   :  { %v3463_v8 = vpop.eup %3462  ;;  %v2560_v20 = vadd.f32 1.0, %v3461_v33 }
 0x741   :  { %v2566_v12 = vadd.f32 1.0, %v3463_v8  ;;  %v3465_v27 = vpop.eup %3464 }
 0x742   :  { %3468 = vrcp.f32 %v2560_v20  ;;  %v3467_v36 = vpop.eup %3466  ;;  %v2573_v17 = vadd.f32 1.0, %v3465_v27 }
 0x743   :  { %3470 = vrcp.f32 %v2566_v12 }
 0x744   :  { %3472 = vrcp.f32 %v2573_v17 }
 0x74c   :  { %v3469_v11 = vpop.eup %3468 }
 0x74d   :  { %v3471_v3 = vpop.eup %3470  ;;  %v2577_v16 = vmul.f32 %v3469_v11, %v3467_v36 }
 0x74e   :  { %v2576_v37 = vmul.f32 %v3471_v3, %v4438_v52  ;;  %v3473_v47 = vpop.eup %3472 }
 0x750   :  { %v2578_v38 = vadd.f32 %v2577_v16, %v2576_v37 }
 0x752   :  { %3474 = vtanh.f32 %v2578_v38 }
 0x75c   :  { %v3475_v57 = vpop.eup %3474 }
 0x75d   :  { %v2580_v58 = vmul.f32 %v3475_v57, %v3473_v47 }
 0x75f   :  { %v2585_v59 = vpack.c.bf16 %v2580_v58, %v2580_v58 }
 0x761   :  { %2811 = vmatmul.mubr.bf16.vlgmr.msra.gmra.mrb[44].mxu0 %v2585_v59  ;;  %2852 = vmatmul.mubr.bf16.vlgmr.msra.gmra.mrb[44].mxu1 %v2585_v59 }
 0x834   :  { %v2812_v60 = vpop.f32.mrb[44].mxu0  ;;  %v2853_v62 = vpop.f32.mrb[44].mxu1 }
 0x835   :  { %v2860_v0 = vadd.f32 %v2812_v60, %v4538_v63  ;;  %v2862_v4 = vadd.f32 %v2853_v62, %v4539_v1  ;;  %v2814_v5 = vpop.f32.mrb[45].mxu0  ;;  %v2855_v6 = vpop.f32.mrb[45].mxu1 }
 0x836   :  { %v2861_v10 = vadd.f32 %v2814_v5, %v4540_v9  ;;  %v2863_v61 = vadd.f32 %v2855_v6, %v4063_v29  ;;  %v2816_v46 = vpop.f32.mrb[46].mxu0  ;;  %v2857_v41 = vpop.f32.mrb[46].mxu1 }
 0x837   :  { %v3197_v56 = vmul.f32 -1.442695, %v2860_v0  ;;  %v2817_v39 = vpop.f32.mrb[47].mxu0  ;;  %v2858_v42 = vpop.f32.mrb[47].mxu1 }
 0x838   :  { %v3198_v43 = vmul.f32 -1.442695, %v2861_v10  ;;  %v3199_v44 = vmul.f32 -1.442695, %v2863_v61 }
 0x839   :  { %3476 = vpow2.f32 %v3197_v56 }
 0x83a   :  { %3478 = vpow2.f32 %v3198_v43 }
 0x83b   :  { %3480 = vpow2.f32 %v3199_v44 }
 0x83c   :  { %3482 = vtanh.f32 %v2862_v4 }
 0x843   :  { %v3477_v45 = vpop.eup %3476 }
 0x844   :  { %v3479_v7 = vpop.eup %3478  ;;  %v2875_v48 = vadd.f32 1.0, %v3477_v45 }
 0x845   :  { %v2881_v50 = vadd.f32 1.0, %v3479_v7  ;;  %v3481_v51 = vpop.eup %3480 }
 0x846   :  { %3484 = vrcp.f32 %v2875_v48  ;;  %v3483_v52 = vpop.eup %3482  ;;  %v2888_v54 = vadd.f32 1.0, %v3481_v51 }
 0x847   :  { %3486 = vrcp.f32 %v2881_v50 }
 0x848   :  { %3488 = vrcp.f32 %v2888_v54 }
 0x850   :  { %v3485_v29 = vpop.eup %3484 }
 0x851   :  { %v3487_v40 = vpop.eup %3486  ;;  %v2892_v53 = vmul.f32 %v3485_v29, %v3483_v52 }
 0x852   :  { %v2891_v55 = vmul.f32 %v3487_v40, %v2578_v38  ;;  %v3489_v15 = vpop.eup %3488 }
 0x854   :  { %v2893_v2 = vadd.f32 %v2892_v53, %v2891_v55 }
 0x856   :  { %3490 = vtanh.f32 %v2893_v2 }
 0x860   :  { %v3491_v22 = vpop.eup %3490 }
 0x861   :  { %v2895_v18 = vmul.f32 %v3491_v22, %v3489_v15 }
 0x863   :  { %v2903_v19 = vmul.f32 %v3200_v24, %v2895_v18 }
 0x865   :  { %2904 = vadd.xlane.f32.xlu0 %v2903_v19 }
 0x8f2   :  { %v2905_v25 = vpop.xlane.xlu0 %2904 }
 0x8f3   :  { %v2908_v21 = vadd.f32 %v2907_v23, %v2905_v25 }
 0x8f5   :  { %v3201_v28 = vmul.f32 -1.442695, %v2908_v21 }
 0x8f7   :  { %3492 = vpow2.f32 %v3201_v28 }
 0x901   :  { %v3493_v49 = vpop.eup %3492 }
 0x902   :  { %v2912_v34 = vadd.f32 1.0, %v3493_v49 }
 0x904   :  { %3494 = vrcp.f32 %v2912_v34 }
 0x90e   :  { %v3495_v35 = vpop.eup %3494 }
 0x90f   :  { %2915 = vst [vmem:[%s4497_s6] sm:$0xff] %v3495_v35 }

</bundles_post_ra>
